<compile_context>
chip_gen: v7x
topology: tpu7x:2x2x1
jax: 0.10.0
libtpu: 0.0.40
codegen_flags: <defaults>
</compile_context>

<pallas_src>
import functools
from typing import NamedTuple

import jax
import jax.numpy as jnp
from jax.experimental import pallas as pl
from jax.experimental.pallas import tpu as pltpu


NEG_SLOPE = 0.01          # nn.LeakyReLU default
_WDTYPE = jnp.bfloat16    # MXU input dtype for weights / activations


def _round_up(x, m):
    return (x + m - 1) // m * m


def _cdiv(a, b):
    return (a + b - 1) // b


def _leaky_relu(v):
    return jnp.where(v > 0, v, NEG_SLOPE * v)


# --------------------------------------------------------------------------
# Kernel
# --------------------------------------------------------------------------
def _multitask_mlp_kernel(
    x_ref,                  # (TILE_B, TK)  bf16 tile of flattened features
    wa_ref,                 # (TK, Np)      bf16 adapter weight tile (streamed)
    ba_ref,                 # (1, Np)       f32 adapter bias
    w1_ref, b1_ref,         # (Np, Hc) bf16 / (1, Hc) f32  fused head layer-1
    w2_ref, b2_ref,         # (Hc, Op) bf16 / (1, Op) f32  block-diag layer-2
    out_ref,                # (TILE_B, Op)  f32 lane-dense packed output slab
    acc_ref,                # (TILE_B, Np)  f32 accumulator scratch
):
    k = pl.program_id(1)

    @pl.when(k == 0)
    def _():
        acc_ref[...] = jnp.zeros_like(acc_ref)

    # feature_adapter matmul, K-tiled, f32 accumulation on the MXU.
    acc_ref[...] += jnp.dot(x_ref[...], wa_ref[...],
                            preferred_element_type=jnp.float32)

    @pl.when(k == pl.num_programs(1) - 1)
    def _():
        # adapter bias + LeakyReLU in f32
        h = _leaky_relu(acc_ref[...] + ba_ref[...])
        # three head first layers fused into one matmul
        t = _leaky_relu(
            jnp.dot(h.astype(w1_ref.dtype), w1_ref[...],
                    preferred_element_type=jnp.float32) + b1_ref[...])
        # three head second layers as one block-diagonal matmul -> one store
        out = (jnp.dot(t.astype(w2_ref.dtype), w2_ref[...],
                       preferred_element_type=jnp.float32) + b2_ref[...])
        out_ref[...] = out.astype(out_ref.dtype)


# --------------------------------------------------------------------------
# Parameters: init + one-time packing
# --------------------------------------------------------------------------
def init_params(key, feat_dim, num_backbone_features, hidden_dim,
                num_landmarks, num_pose_params, num_shape_params,
                dtype=jnp.float32):
    """Deterministic parameter init. Weights stored as (in, out)."""
    def linear(k, din, dout):
        kw, kb = jax.random.split(k)
        scale = 1.0 / jnp.sqrt(jnp.asarray(din, jnp.float32))
        w = jax.random.uniform(kw, (din, dout), dtype, -scale, scale)
        b = jax.random.uniform(kb, (1, dout), dtype, -scale, scale)
        return w, b

    keys = jax.random.split(key, 7)
    params = {}
    params["adapter"] = linear(keys[0], feat_dim, num_backbone_features)
    params["lm1"] = linear(keys[1], num_backbone_features, hidden_dim)
    params["lm2"] = linear(keys[2], hidden_dim, num_landmarks * 3)
    params["pose1"] = linear(keys[3], num_backbone_features, hidden_dim)
    params["pose2"] = linear(keys[4], hidden_dim, num_pose_params * 6)
    params["shape1"] = linear(keys[5], num_backbone_features, hidden_dim)
    params["shape2"] = linear(keys[6], hidden_dim, num_shape_params)
    return params


def pack_params(params):
    """One-time weight padding / packing (OUTSIDE the per-call forward).

    Weights -> bf16 MXU inputs; biases stay f32 (bias + LeakyReLU run in f32).
    The three heads are fused: layer-1 weights concatenated at offsets
    0 / hidden / 2*hidden (only the TOTAL 3*hidden padded to 128); layer-2
    weights become one block-diagonal matrix mapping into a lane-dense packed
    output slab [landmarks | pose | shape | pad].
    """
    wa, ba = params["adapter"]
    wl1, bl1 = params["lm1"]
    wl2, bl2 = params["lm2"]
    wp1, bp1 = params["pose1"]
    wp2, bp2 = params["pose2"]
    ws1, bs1 = params["shape1"]
    ws2, bs2 = params["shape2"]

    feat_dim, nbf = wa.shape
    hidden = wl1.shape[1]
    d_lm, d_pose, d_shape = wl2.shape[1], wp2.shape[1], ws2.shape[1]
    n_out = d_lm + d_pose + d_shape

    Fp = _round_up(feat_dim, 128)
    Np = _round_up(nbf, 128)
    Hc = _round_up(3 * hidden, 128)
    Op = _round_up(n_out, 128)

    wa_p = jnp.zeros((Fp, Np), _WDTYPE).at[:feat_dim, :nbf].set(
        wa.astype(_WDTYPE))
    ba_p = jnp.zeros((1, Np), jnp.float32).at[:, :nbf].set(
        ba.astype(jnp.float32))

    w1_p = (jnp.zeros((Np, Hc), _WDTYPE)
            .at[:nbf, 0:hidden].set(wl1.astype(_WDTYPE))
            .at[:nbf, hidden:2 * hidden].set(wp1.astype(_WDTYPE))
            .at[:nbf, 2 * hidden:3 * hidden].set(ws1.astype(_WDTYPE)))
    b1_p = (jnp.zeros((1, Hc), jnp.float32)
            .at[:, 0:hidden].set(bl1.astype(jnp.float32))
            .at[:, hidden:2 * hidden].set(bp1.astype(jnp.float32))
            .at[:, 2 * hidden:3 * hidden].set(bs1.astype(jnp.float32)))

    w2_p = (jnp.zeros((Hc, Op), _WDTYPE)
            .at[0:hidden, 0:d_lm].set(wl2.astype(_WDTYPE))
            .at[hidden:2 * hidden, d_lm:d_lm + d_pose].set(wp2.astype(_WDTYPE))
            .at[2 * hidden:3 * hidden, d_lm + d_pose:n_out].set(
                ws2.astype(_WDTYPE)))
    b2_p = (jnp.zeros((1, Op), jnp.float32)
            .at[:, 0:d_lm].set(bl2.astype(jnp.float32))
            .at[:, d_lm:d_lm + d_pose].set(bp2.astype(jnp.float32))
            .at[:, d_lm + d_pose:n_out].set(bs2.astype(jnp.float32)))

    return {"wa": wa_p, "ba": ba_p, "w1": w1_p, "b1": b1_p,
            "w2": w2_p, "b2": b2_p}


# --------------------------------------------------------------------------
# Static tiling / VMEM configuration (per-generation, derived from HW info)
# --------------------------------------------------------------------------
class ForwardConfig(NamedTuple):
    feat_dim: int
    nbf: int
    hidden: int
    d_lm: int
    d_pose: int
    d_shape: int
    num_landmarks: int
    num_pose_params: int
    num_shape_params: int
    fp: int
    np_: int
    hc: int
    op: int
    tile_b: int
    tk: int
    x_buffers: int
    vmem_limit: int
    use_buffered: bool = True


def _vmem_capacity_bytes():
    try:
        info = pltpu.get_tpu_info()
        cap = getattr(info, "vmem_capacity_bytes", None)
        if cap:
            return int(cap)
    except Exception:
        pass
    return 64 << 20   # conservative default: v7x per-TensorCore VMEM


def make_config(batch, feat_dim, nbf, hidden, num_landmarks, num_pose_params,
                num_shape_params):
    d_lm = num_landmarks * 3
    d_pose = num_pose_params * 6
    d_shape = num_shape_params
    n_out = d_lm + d_pose + d_shape

    fp = _round_up(feat_dim, 128)
    np_ = _round_up(nbf, 128)
    hc = _round_up(3 * hidden, 128)
    op = _round_up(n_out, 128)

    # usable VMEM from the actual chip generation, with headroom
    usable = max(_vmem_capacity_bytes() - (12 << 20), 16 << 20)

    wb, fb = 2, 4   # bf16 / f32 itemsizes

    def need(tile_b, tk, x_bufs):
        # conservative 2 buffers for weights (in case Buffered(1) is ignored)
        n = 2 * tk * np_ * wb              # adapter weight tile(s)
        n += 2 * np_ * fb                  # adapter bias
        n += 2 * np_ * hc * wb             # fused head layer-1 weight
        n += 2 * hc * fb                   # layer-1 bias
        n += 2 * hc * op * wb              # block-diagonal layer-2 weight
        n += 2 * op * fb                   # layer-2 bias
        n += x_bufs * tile_b * tk * wb     # streamed x tiles
        n += 2 * tile_b * op * fb          # double-buffered output tiles
        n += tile_b * np_ * fb             # f32 accumulator scratch
        n += tile_b * np_ * fb             # h intermediate
        n += tile_b * hc * fb              # t intermediate
        return n

    # batch tile: bf16 sublane multiple (16); prefer >= 2 tiles so v7x can
    # shard the "parallel" batch axis across both TensorCores.
    tile_b = min(256, _round_up(batch, 16))
    while tile_b > 16 and _cdiv(batch, tile_b) < 2:
        tile_b //= 2

    tk, x_bufs, req = None, 2, None
    while True:
        if need(tile_b, fp, 2) <= usable:          # adapter weight resident
            tk, x_bufs, req = fp, 2, need(tile_b, fp, 2)
            break
        for cand in (2048, 1024, 512, 256, 128):   # stream adapter over K
            if cand >= fp or fp % cand != 0:
                continue
            for bufs in (3, 2):                    # deeper buffering if it fits
                if need(tile_b, cand, bufs) <= usable:
                    tk, x_bufs, req = cand, bufs, need(tile_b, cand, bufs)
                    break
            if tk is not None:
                break
        if tk is not None or tile_b <= 16:
            break
        tile_b //= 2
    if tk is None:                                 # last resort
        tk, x_bufs, req = 128, 2, need(tile_b, 128, 2)

    vmem_limit = int(min(max(req + (4 << 20), 16 << 20), usable))

    return ForwardConfig(
        feat_dim=feat_dim, nbf=nbf, hidden=hidden,
        d_lm=d_lm, d_pose=d_pose, d_shape=d_shape,
        num_landmarks=num_landmarks, num_pose_params=num_pose_params,
        num_shape_params=num_shape_params,
        fp=fp, np_=np_, hc=hc, op=op,
        tile_b=tile_b, tk=tk, x_buffers=x_bufs, vmem_limit=vmem_limit,
        use_buffered=True)


# --------------------------------------------------------------------------
# Forward
# --------------------------------------------------------------------------
@functools.partial(jax.jit, static_argnames=("config",))
def multitask_dnn_forward(features_nchw, packed, *, config):
    """features_nchw: backbone output feature map, NCHW (B, C, H, W)."""
    cfg = config
    B = features_nchw.shape[0]
    x = features_nchw.reshape(B, -1)              # == features.view(B, -1)
    assert x.shape[1] == cfg.feat_dim

    x = x.astype(_WDTYPE)                         # bf16 MXU input
    bp = _round_up(B, cfg.tile_b)
    pad_b, pad_f = bp - B, cfg.fp - cfg.feat_dim
    if pad_b or pad_f:                            # only pad when required
        x = jnp.pad(x, ((0, pad_b), (0, pad_f)))

    grid = (bp // cfg.tile_b, cfg.fp // cfg.tk)
    n_k = grid[1]

    def buffered(n):
        return pl.Buffered(n) if cfg.use_buffered else None

    x_spec = pl.BlockSpec((cfg.tile_b, cfg.tk), lambda i, k: (i, k),
                          pipeline_mode=buffered(cfg.x_buffers))
    wa_spec = pl.BlockSpec((cfg.tk, cfg.np_), lambda i, k: (k, 0),
                           pipeline_mode=buffered(
                               1 if n_k == 1 else cfg.x_buffers))

    def resident(shape):
        # constant index_map -> fetched once; single buffer saves weight VMEM
        return pl.BlockSpec(shape, lambda i, k: (0, 0),
                            pipeline_mode=buffered(1))

    in_specs = [
        x_spec,
        wa_spec, resident((1, cfg.np_)),
        resident((cfg.np_, cfg.hc)), resident((1, cfg.hc)),
        resident((cfg.hc, cfg.op)), resident((1, cfg.op)),
    ]
    out_spec = pl.BlockSpec((cfg.tile_b, cfg.op), lambda i, k: (i, 0))

    flops = 2 * bp * (cfg.fp * cfg.np_ + cfg.np_ * cfg.hc + cfg.hc * cfg.op)
    wa_reads = 1 if n_k == 1 else grid[0]         # streamed wa re-read per tile
    bytes_accessed = (bp * cfg.fp * 2 + bp * cfg.op * 4
                      + 2 * cfg.fp * cfg.np_ * wa_reads
                      + 2 * (cfg.np_ * cfg.hc + cfg.hc * cfg.op)
                      + 4 * (cfg.np_ + cfg.hc + cfg.op))
    cost = pl.CostEstimate(flops=int(flops), transcendentals=0,
                           bytes_accessed=int(bytes_accessed))

    out_pad = pl.pallas_call(
        _multitask_mlp_kernel,
        out_shape=jax.ShapeDtypeStruct((bp, cfg.op), jnp.float32),
        grid=grid,
        in_specs=in_specs,
        out_specs=out_spec,
        scratch_shapes=[pltpu.VMEM((cfg.tile_b, cfg.np_), jnp.float32)],
        compiler_params=pltpu.CompilerParams(
            dimension_semantics=("parallel", "arbitrary"),
            vmem_limit_bytes=cfg.vmem_limit,
        ),
        cost_estimate=cost,
    )(x, packed["wa"], packed["ba"], packed["w1"], packed["b1"],
      packed["w2"], packed["b2"])

    # split the packed lane-dense slab (free layout plumbing in the wrapper)
    lm = out_pad[:B, 0:cfg.d_lm]
    pose = out_pad[:B, cfg.d_lm:cfg.d_lm + cfg.d_pose]
    shp = out_pad[:B, cfg.d_lm + cfg.d_pose:cfg.d_lm + cfg.d_pose + cfg.d_shape]
    return {
        "landmarks": lm.reshape(B, cfg.num_landmarks, 3),
        "pose": pose.reshape(B, cfg.num_pose_params, 6),
        "shape": shp.reshape(B, cfg.num_shape_params),
    }


def _reference_forward(x2d, params, num_landmarks, num_pose_params,
                       num_shape_params):
    """Pure-JAX f32 reference of the (post-backbone) forward."""
    def lin(p, v):
        w, b = p
        return v @ w + b

    B = x2d.shape[0]
    h = _leaky_relu(lin(params["adapter"], x2d))
    lm = lin(params["lm2"], _leaky_relu(lin(params["lm1"], h)))
    pose = lin(params["pose2"], _leaky_relu(lin(params["pose1"], h)))
    shp = lin(params["shape2"], _leaky_relu(lin(params["shape1"], h)))
    return {
        "landmarks": lm.reshape(B, num_landmarks, 3),
        "pose": pose.reshape(B, num_pose_params, 6),
        "shape": shp.reshape(B, num_shape_params),
    }


if __name__ == "__main__":
    # Small shapes consistent with the module's forward:
    #   backbone feature map (B, C, H, W) -> flatten -> feature_adapter ->
    #   three MLP heads (landmarks 21*3, pose 52*6, shape 10).
    B, C, H, W = 2, 4, 8, 8                 # backbone output (stand-in)
    feat_dim = C * H * W                    # 256
    num_backbone_features = 32
    mlp_head_hidden_dim = 32
    num_landmarks, num_pose_params, num_shape_params = 21, 52, 10

    key = jax.random.PRNGKey(0)
    k_feat, k_params = jax.random.split(key)

    features = jax.random.normal(k_feat, (B, C, H, W), jnp.float32)
    params = init_params(k_params, feat_dim, num_backbone_features,
                         mlp_head_hidden_dim, num_landmarks, num_pose_params,
                         num_shape_params)
    packed = pack_params(params)            # one-time padding / bf16 cast

    config = make_config(B, feat_dim, num_backbone_features,
                         mlp_head_hidden_dim, num_landmarks, num_pose_params,
                         num_shape_params)
    # Exercise the K-streaming (accumulator) path even at toy sizes.
    if config.fp >= 256:
        config = config._replace(tk=128)

    def run(cfg):
        o = multitask_dnn_forward(features, packed, config=cfg)
        jax.block_until_ready(o)
        return o

    try:
        out = run(config)
    except Exception:
        # Robustness fallback: drop the single-buffer pipeline_mode hints if
        # this Pallas build rejects them on BlockSpecs.
        config = config._replace(use_buffered=False)
        out = run(config)

    assert out["landmarks"].shape == (B, num_landmarks, 3)
    assert out["pose"].shape == (B, num_pose_params, 6)
    assert out["shape"].shape == (B, num_shape_params)

    # Numerical check against pure-JAX f32 reference (post-backbone math);
    # tolerance covers bf16 weight/activation rounding.
    ref = _reference_forward(features.reshape(B, -1), params,
                             num_landmarks, num_pose_params, num_shape_params)
    for k in ("landmarks", "pose", "shape"):
        err = float(jnp.max(jnp.abs(out[k].astype(jnp.float32) - ref[k])))
        assert err < 5e-2, f"mismatch on {k}: max abs err {err}"

    print("KERNEL_OK")
</pallas_src>

<mosaic_0001>
module attributes {stable_mosaic.version = 11 : i64} {
  func.func @_multitask_mlp_kernel(%arg0: i32, %arg1: i32, %arg2: memref<16x128xbf16, #tpu.memory_space<vmem>>, %arg3: memref<128x128xbf16, #tpu.memory_space<vmem>>, %arg4: memref<1x128xf32, #tpu.memory_space<vmem>>, %arg5: memref<128x128xbf16, #tpu.memory_space<vmem>>, %arg6: memref<1x128xf32, #tpu.memory_space<vmem>>, %arg7: memref<128x512xbf16, #tpu.memory_space<vmem>>, %arg8: memref<1x512xf32, #tpu.memory_space<vmem>>, %arg9: memref<16x512xf32, #tpu.memory_space<vmem>>, %arg10: memref<16x128xf32, #tpu.memory_space<vmem>>) attributes {dimension_semantics = [#tpu.dimension_semantics<parallel>, #tpu.dimension_semantics<arbitrary>], iteration_bounds = array<i64: 1, 2>, scalar_prefetch = 0 : i64, scratch_operands = 1 : i64, tpu.core_type = #tpu.core_type<tc>, window_params = [{pipeline_mode = #tpu.pipeline_mode<double_buffered>, transform_indices = @transform_0, window_bounds = array<i64: 16, 128>}, {pipeline_mode = #tpu.pipeline_mode<double_buffered>, transform_indices = @transform_1, window_bounds = array<i64: 128, 128>}, {pipeline_mode = #tpu.pipeline_mode<synchronous>, transform_indices = @transform_2, window_bounds = array<i64: 1, 128>}, {pipeline_mode = #tpu.pipeline_mode<synchronous>, transform_indices = @transform_3, window_bounds = array<i64: 128, 128>}, {pipeline_mode = #tpu.pipeline_mode<synchronous>, transform_indices = @transform_4, window_bounds = array<i64: 1, 128>}, {pipeline_mode = #tpu.pipeline_mode<synchronous>, transform_indices = @transform_5, window_bounds = array<i64: 128, 512>}, {pipeline_mode = #tpu.pipeline_mode<synchronous>, transform_indices = @transform_6, window_bounds = array<i64: 1, 512>}, {transform_indices = @transform_7, window_bounds = array<i64: 16, 512>}]} {
    %c0_i32 = arith.constant 0 : i32
    %0 = arith.cmpi eq, %arg1, %c0_i32 : i32
    %1 = arith.extui %0 : i1 to i32
    %c0_i32_0 = arith.constant 0 : i32
    %2 = arith.cmpi ne, %1, %c0_i32_0 : i32
    scf.if %2 {
      %cst_9 = arith.constant 0.000000e+00 : f32
      %12 = vector.broadcast %cst_9 : f32 to vector<16x128xf32>
      %c0_10 = arith.constant 0 : index
      %c0_11 = arith.constant 0 : index
      %13 = vector.load %arg10[%c0_10, %c0_11] : memref<16x128xf32, #tpu.memory_space<vmem>>, vector<16x128xf32>
      tpu.vector_store %arg10[%c0_10, %c0_11], %12 {strides = array<i32>} : memref<16x128xf32, #tpu.memory_space<vmem>>, vector<16x128xf32>,
    } else {
    }
    %c0 = arith.constant 0 : index
    %c0_1 = arith.constant 0 : index
    %3 = vector.load %arg10[%c0, %c0_1] : memref<16x128xf32, #tpu.memory_space<vmem>>, vector<16x128xf32>
    %c0_2 = arith.constant 0 : index
    %c0_3 = arith.constant 0 : index
    %4 = vector.load %arg2[%c0_2, %c0_3] : memref<16x128xbf16, #tpu.memory_space<vmem>>, vector<16x128xbf16>
    %c0_4 = arith.constant 0 : index
    %c0_5 = arith.constant 0 : index
    %5 = vector.load %arg3[%c0_4, %c0_5] : memref<128x128xbf16, #tpu.memory_space<vmem>>, vector<128x128xbf16>
    %cst = arith.constant dense<0.000000e+00> : vector<16x128xf32>
    %6 = tpu.matmul %4, %5, %cst {dimension_numbers = #tpu.dot_dimension_numbers<[1], [0], [0], [1], [0, 0, 1, 1], [], []>} : vector<16x128xbf16>, vector<128x128xbf16>, vector<16x128xf32> -> vector<16x128xf32>
    %7 = arith.addf %3, %6 : vector<16x128xf32>
    %c0_6 = arith.constant 0 : index
    %c0_7 = arith.constant 0 : index
    %8 = vector.load %arg10[%c0_6, %c0_7] : memref<16x128xf32, #tpu.memory_space<vmem>>, vector<16x128xf32>
    tpu.vector_store %arg10[%c0_6, %c0_7], %7 {strides = array<i32>} : memref<16x128xf32, #tpu.memory_space<vmem>>, vector<16x128xf32>,
    %c1_i32 = arith.constant 1 : i32
    %9 = arith.cmpi eq, %arg1, %c1_i32 : i32
    %10 = arith.extui %9 : i1 to i32
    %c0_i32_8 = arith.constant 0 : i32
    %11 = arith.cmpi ne, %10, %c0_i32_8 : i32
    scf.if %11 {
      %c0_9 = arith.constant 0 : index
      %c0_10 = arith.constant 0 : index
      %12 = vector.load %arg10[%c0_9, %c0_10] : memref<16x128xf32, #tpu.memory_space<vmem>>, vector<16x128xf32>
      %c0_11 = arith.constant 0 : index
      %c0_12 = arith.constant 0 : index
      %13 = vector.load %arg4[%c0_11, %c0_12] : memref<1x128xf32, #tpu.memory_space<vmem>>, vector<1x128xf32>
      %14 = vector.broadcast %13 : vector<1x128xf32> to vector<16x128xf32>
      %15 = arith.addf %12, %14 : vector<16x128xf32>
      %cst_13 = arith.constant 0.000000e+00 : f32
      %16 = vector.broadcast %cst_13 : f32 to vector<16x128xf32>
      %17 = arith.cmpf ogt, %15, %16 : vector<16x128xf32>
      %cst_14 = arith.constant 0.00999999977 : f32
      %18 = vector.broadcast %cst_14 : f32 to vector<16x128xf32>
      %19 = arith.mulf %18, %15 : vector<16x128xf32>
      %20 = arith.select %17, %15, %19 : vector<16x128xi1>, vector<16x128xf32>
      %21 = arith.truncf %20 : vector<16x128xf32> to vector<16x128xbf16>
      %c0_15 = arith.constant 0 : index
      %c0_16 = arith.constant 0 : index
      %22 = vector.load %arg5[%c0_15, %c0_16] : memref<128x128xbf16, #tpu.memory_space<vmem>>, vector<128x128xbf16>
      %cst_17 = arith.constant dense<0.000000e+00> : vector<16x128xf32>
      %23 = tpu.matmul %21, %22, %cst_17 {dimension_numbers = #tpu.dot_dimension_numbers<[1], [0], [0], [1], [0, 0, 1, 1], [], []>} : vector<16x128xbf16>, vector<128x128xbf16>, vector<16x128xf32> -> vector<16x128xf32>
      %c0_18 = arith.constant 0 : index
      %c0_19 = arith.constant 0 : index
      %24 = vector.load %arg6[%c0_18, %c0_19] : memref<1x128xf32, #tpu.memory_space<vmem>>, vector<1x128xf32>
      %25 = vector.broadcast %24 : vector<1x128xf32> to vector<16x128xf32>
      %26 = arith.addf %23, %25 : vector<16x128xf32>
      %cst_20 = arith.constant 0.000000e+00 : f32
      %27 = vector.broadcast %cst_20 : f32 to vector<16x128xf32>
      %28 = arith.cmpf ogt, %26, %27 : vector<16x128xf32>
      %cst_21 = arith.constant 0.00999999977 : f32
      %29 = vector.broadcast %cst_21 : f32 to vector<16x128xf32>
      %30 = arith.mulf %29, %26 : vector<16x128xf32>
      %31 = arith.select %28, %26, %30 : vector<16x128xi1>, vector<16x128xf32>
      %32 = arith.truncf %31 : vector<16x128xf32> to vector<16x128xbf16>
      %c0_22 = arith.constant 0 : index
      %c0_23 = arith.constant 0 : index
      %33 = vector.load %arg7[%c0_22, %c0_23] : memref<128x512xbf16, #tpu.memory_space<vmem>>, vector<128x512xbf16>
      %cst_24 = arith.constant dense<0.000000e+00> : vector<16x512xf32>
      %34 = tpu.matmul %32, %33, %cst_24 {dimension_numbers = #tpu.dot_dimension_numbers<[1], [0], [0], [1], [0, 0, 1, 1], [], []>} : vector<16x128xbf16>, vector<128x512xbf16>, vector<16x512xf32> -> vector<16x512xf32>
      %c0_25 = arith.constant 0 : index
      %c0_26 = arith.constant 0 : index
      %35 = vector.load %arg8[%c0_25, %c0_26] : memref<1x512xf32, #tpu.memory_space<vmem>>, vector<1x512xf32>
      %36 = vector.broadcast %35 : vector<1x512xf32> to vector<16x512xf32>
      %37 = arith.addf %34, %36 : vector<16x512xf32>
      %c0_27 = arith.constant 0 : index
      %c0_28 = arith.constant 0 : index
      %38 = vector.load %arg9[%c0_27, %c0_28] : memref<16x512xf32, #tpu.memory_space<vmem>>, vector<16x512xf32>
      tpu.vector_store %arg9[%c0_27, %c0_28], %37 {strides = array<i32>} : memref<16x512xf32, #tpu.memory_space<vmem>>, vector<16x512xf32>,
    } else {
    }
    return
  }
  func.func @transform_0(%arg0: i32, %arg1: i32) -> (i32, i32) {
    %c0_i32 = arith.constant 0 : i32
    return %arg0, %arg1 : i32, i32
  }
  func.func @transform_1(%arg0: i32, %arg1: i32) -> (i32, i32) {
    %c0_i32 = arith.constant 0 : i32
    %c0_i32_0 = arith.constant 0 : i32
    return %arg1, %c0_i32 : i32, i32
  }
  func.func @transform_2(%arg0: i32, %arg1: i32) -> (i32, i32) {
    %c0_i32 = arith.constant 0 : i32
    %c0_i32_0 = arith.constant 0 : i32
    %c0_i32_1 = arith.constant 0 : i32
    return %c0_i32, %c0_i32_0 : i32, i32
  }
  func.func @transform_3(%arg0: i32, %arg1: i32) -> (i32, i32) {
    %c0_i32 = arith.constant 0 : i32
    %c0_i32_0 = arith.constant 0 : i32
    %c0_i32_1 = arith.constant 0 : i32
    return %c0_i32, %c0_i32_0 : i32, i32
  }
  func.func @transform_4(%arg0: i32, %arg1: i32) -> (i32, i32) {
    %c0_i32 = arith.constant 0 : i32
    %c0_i32_0 = arith.constant 0 : i32
    %c0_i32_1 = arith.constant 0 : i32
    return %c0_i32, %c0_i32_0 : i32, i32
  }
  func.func @transform_5(%arg0: i32, %arg1: i32) -> (i32, i32) {
    %c0_i32 = arith.constant 0 : i32
    %c0_i32_0 = arith.constant 0 : i32
    %c0_i32_1 = arith.constant 0 : i32
    return %c0_i32, %c0_i32_0 : i32, i32
  }
  func.func @transform_6(%arg0: i32, %arg1: i32) -> (i32, i32) {
    %c0_i32 = arith.constant 0 : i32
    %c0_i32_0 = arith.constant 0 : i32
    %c0_i32_1 = arith.constant 0 : i32
    return %c0_i32, %c0_i32_0 : i32, i32
  }
  func.func @transform_7(%arg0: i32, %arg1: i32) -> (i32, i32) {
    %c0_i32 = arith.constant 0 : i32
    %c0_i32_0 = arith.constant 0 : i32
    return %arg0, %c0_i32 : i32, i32
  }
}

module attributes {stable_mosaic.version = 11 : i64} {
  func.func @_multitask_mlp_kernel(%arg0: i32, %arg1: i32, %arg2: memref<16x128xbf16, #tpu.memory_space<vmem>>, %arg3: memref<128x128xbf16, #tpu.memory_space<vmem>>, %arg4: memref<1x128xf32, #tpu.memory_space<vmem>>, %arg5: memref<128x128xbf16, #tpu.memory_space<vmem>>, %arg6: memref<1x128xf32, #tpu.memory_space<vmem>>, %arg7: memref<128x512xbf16, #tpu.memory_space<vmem>>, %arg8: memref<1x512xf32, #tpu.memory_space<vmem>>, %arg9: memref<16x512xf32, #tpu.memory_space<vmem>>, %arg10: memref<16x128xf32, #tpu.memory_space<vmem>>) attributes {dimension_semantics = [#tpu.dimension_semantics<parallel>, #tpu.dimension_semantics<arbitrary>], iteration_bounds = array<i64: 1, 2>, scalar_prefetch = 0 : i64, scratch_operands = 1 : i64, tpu.core_type = #tpu.core_type<tc>, window_params = [{transform_indices = @transform_0, window_bounds = array<i64: 16, 128>}, {transform_indices = @transform_1, window_bounds = array<i64: 128, 128>}, {pipeline_mode = #tpu.pipeline_mode<synchronous>, transform_indices = @transform_2, window_bounds = array<i64: 1, 128>}, {pipeline_mode = #tpu.pipeline_mode<synchronous>, transform_indices = @transform_3, window_bounds = array<i64: 128, 128>}, {pipeline_mode = #tpu.pipeline_mode<synchronous>, transform_indices = @transform_4, window_bounds = array<i64: 1, 128>}, {pipeline_mode = #tpu.pipeline_mode<synchronous>, transform_indices = @transform_5, window_bounds = array<i64: 128, 512>}, {pipeline_mode = #tpu.pipeline_mode<synchronous>, transform_indices = @transform_6, window_bounds = array<i64: 1, 512>}, {transform_indices = @transform_7, window_bounds = array<i64: 16, 512>}]} {
    %c0_i32 = arith.constant 0 : i32
    %0 = arith.cmpi eq, %arg1, %c0_i32 : i32
    %1 = arith.extui %0 : i1 to i32
    %c0_i32_0 = arith.constant 0 : i32
    %2 = arith.cmpi ne, %1, %c0_i32_0 : i32
    scf.if %2 {
      %cst_9 = arith.constant 0.000000e+00 : f32
      %12 = vector.broadcast %cst_9 : f32 to vector<16x128xf32>
      %c0_10 = arith.constant 0 : index
      %c0_11 = arith.constant 0 : index
      %13 = vector.load %arg10[%c0_10, %c0_11] : memref<16x128xf32, #tpu.memory_space<vmem>>, vector<16x128xf32>
      tpu.vector_store %arg10[%c0_10, %c0_11], %12 {strides = array<i32>} : memref<16x128xf32, #tpu.memory_space<vmem>>, vector<16x128xf32>,
    } else {
    }
    %c0 = arith.constant 0 : index
    %c0_1 = arith.constant 0 : index
    %3 = vector.load %arg10[%c0, %c0_1] : memref<16x128xf32, #tpu.memory_space<vmem>>, vector<16x128xf32>
    %c0_2 = arith.constant 0 : index
    %c0_3 = arith.constant 0 : index
    %4 = vector.load %arg2[%c0_2, %c0_3] : memref<16x128xbf16, #tpu.memory_space<vmem>>, vector<16x128xbf16>
    %c0_4 = arith.constant 0 : index
    %c0_5 = arith.constant 0 : index
    %5 = vector.load %arg3[%c0_4, %c0_5] : memref<128x128xbf16, #tpu.memory_space<vmem>>, vector<128x128xbf16>
    %cst = arith.constant dense<0.000000e+00> : vector<16x128xf32>
    %6 = tpu.matmul %4, %5, %cst {dimension_numbers = #tpu.dot_dimension_numbers<[1], [0], [0], [1], [0, 0, 1, 1], [], []>} : vector<16x128xbf16>, vector<128x128xbf16>, vector<16x128xf32> -> vector<16x128xf32>
    %7 = arith.addf %3, %6 : vector<16x128xf32>
    %c0_6 = arith.constant 0 : index
    %c0_7 = arith.constant 0 : index
    %8 = vector.load %arg10[%c0_6, %c0_7] : memref<16x128xf32, #tpu.memory_space<vmem>>, vector<16x128xf32>
    tpu.vector_store %arg10[%c0_6, %c0_7], %7 {strides = array<i32>} : memref<16x128xf32, #tpu.memory_space<vmem>>, vector<16x128xf32>,
    %c1_i32 = arith.constant 1 : i32
    %9 = arith.cmpi eq, %arg1, %c1_i32 : i32
    %10 = arith.extui %9 : i1 to i32
    %c0_i32_8 = arith.constant 0 : i32
    %11 = arith.cmpi ne, %10, %c0_i32_8 : i32
    scf.if %11 {
      %c0_9 = arith.constant 0 : index
      %c0_10 = arith.constant 0 : index
      %12 = vector.load %arg10[%c0_9, %c0_10] : memref<16x128xf32, #tpu.memory_space<vmem>>, vector<16x128xf32>
      %c0_11 = arith.constant 0 : index
      %c0_12 = arith.constant 0 : index
      %13 = vector.load %arg4[%c0_11, %c0_12] : memref<1x128xf32, #tpu.memory_space<vmem>>, vector<1x128xf32>
      %14 = vector.broadcast %13 : vector<1x128xf32> to vector<16x128xf32>
      %15 = arith.addf %12, %14 : vector<16x128xf32>
      %cst_13 = arith.constant 0.000000e+00 : f32
      %16 = vector.broadcast %cst_13 : f32 to vector<16x128xf32>
      %17 = arith.cmpf ogt, %15, %16 : vector<16x128xf32>
      %cst_14 = arith.constant 0.00999999977 : f32
      %18 = vector.broadcast %cst_14 : f32 to vector<16x128xf32>
      %19 = arith.mulf %18, %15 : vector<16x128xf32>
      %20 = arith.select %17, %15, %19 : vector<16x128xi1>, vector<16x128xf32>
      %21 = arith.truncf %20 : vector<16x128xf32> to vector<16x128xbf16>
      %c0_15 = arith.constant 0 : index
      %c0_16 = arith.constant 0 : index
      %22 = vector.load %arg5[%c0_15, %c0_16] : memref<128x128xbf16, #tpu.memory_space<vmem>>, vector<128x128xbf16>
      %cst_17 = arith.constant dense<0.000000e+00> : vector<16x128xf32>
      %23 = tpu.matmul %21, %22, %cst_17 {dimension_numbers = #tpu.dot_dimension_numbers<[1], [0], [0], [1], [0, 0, 1, 1], [], []>} : vector<16x128xbf16>, vector<128x128xbf16>, vector<16x128xf32> -> vector<16x128xf32>
      %c0_18 = arith.constant 0 : index
      %c0_19 = arith.constant 0 : index
      %24 = vector.load %arg6[%c0_18, %c0_19] : memref<1x128xf32, #tpu.memory_space<vmem>>, vector<1x128xf32>
      %25 = vector.broadcast %24 : vector<1x128xf32> to vector<16x128xf32>
      %26 = arith.addf %23, %25 : vector<16x128xf32>
      %cst_20 = arith.constant 0.000000e+00 : f32
      %27 = vector.broadcast %cst_20 : f32 to vector<16x128xf32>
      %28 = arith.cmpf ogt, %26, %27 : vector<16x128xf32>
      %cst_21 = arith.constant 0.00999999977 : f32
      %29 = vector.broadcast %cst_21 : f32 to vector<16x128xf32>
      %30 = arith.mulf %29, %26 : vector<16x128xf32>
      %31 = arith.select %28, %26, %30 : vector<16x128xi1>, vector<16x128xf32>
      %32 = arith.truncf %31 : vector<16x128xf32> to vector<16x128xbf16>
      %c0_22 = arith.constant 0 : index
      %c0_23 = arith.constant 0 : index
      %33 = vector.load %arg7[%c0_22, %c0_23] : memref<128x512xbf16, #tpu.memory_space<vmem>>, vector<128x512xbf16>
      %cst_24 = arith.constant dense<0.000000e+00> : vector<16x512xf32>
      %34 = tpu.matmul %32, %33, %cst_24 {dimension_numbers = #tpu.dot_dimension_numbers<[1], [0], [0], [1], [0, 0, 1, 1], [], []>} : vector<16x128xbf16>, vector<128x512xbf16>, vector<16x512xf32> -> vector<16x512xf32>
      %c0_25 = arith.constant 0 : index
      %c0_26 = arith.constant 0 : index
      %35 = vector.load %arg8[%c0_25, %c0_26] : memref<1x512xf32, #tpu.memory_space<vmem>>, vector<1x512xf32>
      %36 = vector.broadcast %35 : vector<1x512xf32> to vector<16x512xf32>
      %37 = arith.addf %34, %36 : vector<16x512xf32>
      %c0_27 = arith.constant 0 : index
      %c0_28 = arith.constant 0 : index
      %38 = vector.load %arg9[%c0_27, %c0_28] : memref<16x512xf32, #tpu.memory_space<vmem>>, vector<16x512xf32>
      tpu.vector_store %arg9[%c0_27, %c0_28], %37 {strides = array<i32>} : memref<16x512xf32, #tpu.memory_space<vmem>>, vector<16x512xf32>,
    } else {
    }
    return
  }
  func.func @transform_0(%arg0: i32, %arg1: i32) -> (i32, i32) {
    %c0_i32 = arith.constant 0 : i32
    return %arg0, %arg1 : i32, i32
  }
  func.func @transform_1(%arg0: i32, %arg1: i32) -> (i32, i32) {
    %c0_i32 = arith.constant 0 : i32
    %c0_i32_0 = arith.constant 0 : i32
    return %arg1, %c0_i32 : i32, i32
  }
  func.func @transform_2(%arg0: i32, %arg1: i32) -> (i32, i32) {
    %c0_i32 = arith.constant 0 : i32
    %c0_i32_0 = arith.constant 0 : i32
    %c0_i32_1 = arith.constant 0 : i32
    return %c0_i32, %c0_i32_0 : i32, i32
  }
  func.func @transform_3(%arg0: i32, %arg1: i32) -> (i32, i32) {
    %c0_i32 = arith.constant 0 : i32
    %c0_i32_0 = arith.constant 0 : i32
    %c0_i32_1 = arith.constant 0 : i32
    return %c0_i32, %c0_i32_0 : i32, i32
  }
  func.func @transform_4(%arg0: i32, %arg1: i32) -> (i32, i32) {
    %c0_i32 = arith.constant 0 : i32
    %c0_i32_0 = arith.constant 0 : i32
    %c0_i32_1 = arith.constant 0 : i32
    return %c0_i32, %c0_i32_0 : i32, i32
  }
  func.func @transform_5(%arg0: i32, %arg1: i32) -> (i32, i32) {
    %c0_i32 = arith.constant 0 : i32
    %c0_i32_0 = arith.constant 0 : i32
    %c0_i32_1 = arith.constant 0 : i32
    return %c0_i32, %c0_i32_0 : i32, i32
  }
  func.func @transform_6(%arg0: i32, %arg1: i32) -> (i32, i32) {
    %c0_i32 = arith.constant 0 : i32
    %c0_i32_0 = arith.constant 0 : i32
    %c0_i32_1 = arith.constant 0 : i32
    return %c0_i32, %c0_i32_0 : i32, i32
  }
  func.func @transform_7(%arg0: i32, %arg1: i32) -> (i32, i32) {
    %c0_i32 = arith.constant 0 : i32
    %c0_i32_0 = arith.constant 0 : i32
    return %arg0, %c0_i32 : i32, i32
  }
}

</mosaic_0001>

<bundles_post_ra>
// kernel: multitask_dnn_forward.1
= control target key start
LH: loop header
LB: loop body
LE: loop exit
PB: predicated region body
PF: predicated region fallthrough
CT: control target
= control target key end

     0   :  { %12 = vsyncpa [#allocation5], 0  ;;  %s1688_s0 = inlined_call_operand.vmem [shape: bf16[16,256], index: 0, kind: input, shape index: {}]   ;;  %s1689_s1 = inlined_call_operand.vmem [shape: bf16[256,128], index: 1, kind: input, shape index: {}]   ;;  %s1690_s2 = inlined_call_operand.vmem [shape: f32[1,128], index: 2, kind: input, shape index: {}]   ;;  %s1691_s3 = inlined_call_operand.hbm [shape: bf16[128,128], index: 3, kind: input, shape index: {}]   ;;  %s1692_s4 = inlined_call_operand.vmem [shape: f32[1,128], index: 4, kind: input, shape index: {}]   ;;  %s1693_s5 = inlined_call_operand.hbm [shape: bf16[128,512], index: 5, kind: input, shape index: {}]   ;;  %s1694_s6 = inlined_call_operand.vmem [shape: f32[1,512], index: 6, kind: input, shape index: {}]   ;;  %s1695_s7 = inlined_call_operand.vmem [shape: f32[16,512], index: 7, kind: output, shape index: {}]  }
   0x1   :  { %13 = vsyncpa [#allocation7], 0  ;;  %s1498_s24 = smov 0   ;;  %s1500_s25 = smov 0  }
   0x2   :  { %s1502_s26 = smov 0   ;;  %s1504_s27 = smov 0  }
   0x3   :  { %s1506_s28 = smov 0  }
   0x4 LB: > { %s1078_s29 = sadd.s32 4294967295, %s1444_s28   ;;  %s28_s30 = sadd.s32 1, %s1440_s27  ;;  %s1444_s28 = sphi %s1506_s28, %s19_s28   ;;  %s1440_s27 = sphi %s1504_s27, %s1712_s27   ;;  %s1436_s26 = sphi %s1502_s26, %s1711_s26   ;;  %s1432_s25 = sphi %s1500_s25, %s1710_s25   ;;  %s1428_s24 = sphi %s1498_s24, %s1709_s24  }
   0x5   : > { %p29_p0 = scmp.ge.s32.totalorder %s28_s30, 2  ;;  %s40_s8 = sadd.s32 1, %s1432_s25 }
   0x6   : > { %p47_p1 = scmp.ne.s32.totalorder %s1432_s25, %s1428_s24  ;;  %p48_p2 = scmp.eq.s32.totalorder %s1444_s28, 0 }
   0x7   : > { %s1714_s30 = smov (%p29_p0, %s28_s30), 0  ;;  %p1079_p4 = scmp.ge.s32.totalorder %s1444_s28, 1 }
   0x8   : > { %1700 = sst [smem:[#allocation10_spill]] %s1714_s30  ;;  %p1531_p3 = por %p48_p2, %p47_p1 }
   0x9   : > { %s36_s10 = ssub.s32 %s1440_s27, %s1714_s30  ;;  %p221_p5 = scmp.lt.s32.totalorder %s1444_s28, 3 }
   0xa   : > { %s1701_s9 = scalar_select %p1531_p3, 1, 0 }
   0xb   : > { %p38_p6 = scmp.eq.s32.totalorder %s36_s10, 0  ;;  %p1539_p7 = pnand %p1079_p4, %p221_p5 }
   0xc   : > { %p1543_p8 = scmp.eq.s32.totalorder %s1078_s29, 0  ;;  %s1446_s14 = smov [#allocation4]  }
   0xd   : > { %s1702_s11 = scalar_select %p1539_p7, 1, 0 }
   0xe   : > { %s1703_s12 = scalar_select %p1543_p8, 1, 0 }
   0xf   : > { %s1548_s13 = scalar_select %p38_p6, %s1432_s25, %s40_s8  }
  0x10   : > { %p1214_p9 = pneg %p1539_p7  ;;  %s236_s15 = sshll.u32 %s1446_s14, 4  ;;  %s237_s15 = int_to_ptr.vmem [resolvable:$true] %s236_s15 }
  0x11   : > { %s1447_s17 = smov [#allocation6]   ;;  %s1342_s21 = scalar_lea.hbm %s1691_s3, 1024 }
  0x12   : > { %p1554_p10 = pnand %p1543_p8, %p1214_p9  ;;  %s252_s18 = sshll.u32 %s1447_s17, 4  ;;  %s253_s18 = int_to_ptr.vmem [resolvable:$true] %s252_s18 }
  0x13   : > { %p1343_p11 = scmp.ne.s32.totalorder %s1691_s3, %s1342_s21  ;;  %p1349_p1 = scmp.lt.u32.totalorder %s1342_s21, %s1691_s3 }
  0x14   : > { %p1344_p12 = pneg %p1554_p10 }
  0x16   : > { %p1345_p13 = pnand %p1344_p12, %p1343_p11 }
  0x18   : > { %p1346_p0 = pneg %p1345_p13 }
  0x1a   : > { %p1351_p2 = pnand %p1349_p1, %p1346_p0 }
  0x1c   : > { %1354 = shalt.err (!%p1351_p2)
}
  0x1d   : > { %s1355_s10 = scalar_lea.vmem %s237_s15, 1024  ;;  %p1363_p9 = scmp.lt.s32.totalorder %s237_s15, %s237_s15 }
  0x1e   : > { %p1356_p4 = scmp.ne.s32.totalorder %s237_s15, %s1355_s10  ;;  %p1364_p8 = scmp.lt.s32.totalorder %s1355_s10, %s1355_s10 }
  0x20   : > { %p1358_p5 = pnand %p1356_p4, %p1344_p12  ;;  %p1365_p7 = por %p1364_p8, %p1363_p9 }
  0x22   : > { %p1359_p6 = pneg %p1358_p5 }
  0x24   : > { %p1366_p3 = pnand %p1365_p7, %p1359_p6 }
  0x26   : > { %1369 = shalt.err (!%p1366_p3)
}
  0x27   : > { %s1448_s14 = smov 64   ;;  %s1449_s17 = smov 4  }
  0x28   : > { %1217 = dma.hbm_to_vmem [thread:$0]  (!%p1554_p10), %s1691_s3, 1024, %s237_s15, [#allocation5], %s1448_s14, %s1448_s14, %s1449_s17  }
  0x29   : > { %s1370_s23 = scalar_lea.hbm %s1693_s5, 4096 }
  0x2a   : > { %p1371_p8 = scmp.ne.s32.totalorder %s1693_s5, %s1370_s23  ;;  %p1377_p11 = scmp.lt.u32.totalorder %s1370_s23, %s1693_s5 }
  0x2c   : > { %p1373_p3 = pnand %p1371_p8, %p1344_p12 }
  0x2e   : > { %p1374_p7 = pneg %p1373_p3 }
  0x30   : > { %p1379_p13 = pnand %p1377_p11, %p1374_p7 }
  0x32   : > { %1382 = shalt.err (!%p1379_p13)
}
  0x33   : > { %s1383_s15 = scalar_lea.vmem %s253_s18, 4096  ;;  %p1391_p4 = scmp.lt.s32.totalorder %s253_s18, %s253_s18 }
  0x34   : > { %p1384_p0 = scmp.ne.s32.totalorder %s253_s18, %s1383_s15  ;;  %p1392_p5 = scmp.lt.s32.totalorder %s1383_s15, %s1383_s15 }
  0x36   : > { %p1386_p1 = pnand %p1384_p0, %p1344_p12  ;;  %p1393_p6 = por %p1392_p5, %p1391_p4 }
  0x38   : > { %p1387_p2 = pneg %p1386_p1 }
  0x3a   : > { %p1394_p9 = pnand %p1393_p6, %p1387_p2 }
  0x3c   : > { %1397 = shalt.err (!%p1394_p9)
}
  0x3d   : > { %s1450_s14 = smov 256   ;;  %s1451_s17 = smov 16  }
  0x3e   : > { %1220 = dma.hbm_to_vmem [thread:$0]  (!%p1554_p10), %s1693_s5, 4096, %s253_s18, [#allocation7], %s1450_s14, %s1450_s14, %s1451_s17  }
  0x3f   : > { %p1082_p8 = scmp.ge.s32.totalorder %s1444_s28, 2 }
  0x40   : > { %p1705_p3 = scmp.ne.s32.totalorder (!%p1082_p8), %s1701_s9, 0 }
  0x41   : > { %265 = sbr.rel (%p1082_p8) target bundleno = 79 (0x4f), region = 36 }
  0x48   : > { %268 = sbr.rel (!%p1705_p3) target bundleno = 79 (0x4f), region = 40  ;;  %s270_s20 = sand.u32 (%p1705_p3), 1, %s1432_s25  }
  0x49   : > { %s1084_s21 = sshll.u32 (%p1705_p3), %s1440_s27, 2  ;;  %s1083_s22 = sshll.u32 (%p1705_p3), %s270_s20, 3 }
  0x4a   : > { %s277_s8 = scalar_lea.vmem (%p1705_p3), %s1688_s0, %s1084_s21  ;;  %s272_s16 = scalar_lea.vmem (%p1705_p3), [#allocation3], %s1083_s22 }
  0x4b   : > { %v293_v0 = vld [vmem:[%s277_s8] sm:$0xf] (%p1705_p3)  ;;  %v295_v1 = vld [vmem:[%s277_s8 + $0x8] sm:$0xf] (%p1705_p3) }
  0x4c   : > { %294 = vst [vmem:[%s272_s16] sm:$0xf] (%p1705_p3), %v293_v0  ;;  %296 = vst [vmem:[%s272_s16 + $0x4] sm:$0xf] (%p1705_p3), %v295_v1 }
  0x4f PF: > { %p1706_p10 = scmp.ne.s32.totalorder %s1702_s11, 0 }
  0x50   : > { %s338_s9 = sand.u32 (!%p1706_p10), 1, %s1428_s24   ;;  %p1707_p12 = scmp.ne.s32.totalorder (!%p1706_p10), %s1703_s12, 0 }
  0x51   : > { %335 = sbr.rel (%p1706_p10) target bundleno = 803 (0x323), region = 85  ;;  %s1611_s18 = sshll.u32 (!%p1706_p10), %s338_s9, 3 }
  0x52   : > { %s340_s10 = scalar_lea.vmem (!%p1706_p10), [#allocation3], %s1611_s18 }
  0x58   : > { %1419 = dma.done.wait (%p1707_p12), [#allocation5], 1024  }
  0x59   : > { %1421 = vsyncadd (%p1707_p12), [#allocation5], 4294966272 }
  0x5a   : > { %1423 = dma.done.wait (%p1707_p12), [#allocation7], 4096  }
  0x5b   : > { %1425 = vsyncadd (%p1707_p12), [#allocation7], 4294963200  ;;  %s1089_s11 = sshll.u32 %s1436_s26, 4  ;;  %p1091_p11 = scmp.ne.s32.totalorder %s1436_s26, 0 }
  0x5c   : > { %p385_p7 = scmp.lt.s32.totalorder %s1089_s11, 31  ;;  %v1452_v2 = vmov (!%p1091_p11), 0.0  }
  0x5d   : > { %401 = sbr.rel (%p1091_p11) target bundleno = 100 (0x64), region = 101  ;;  %402 = vst [vmem:[#allocation2] sm:$0xff] (!%p1091_p11), %v1452_v2  ;;  %403 = vst [vmem:[#allocation2 + $0x8] sm:$0xff] (!%p1091_p11), %v1452_v2 }
  0x5e   : > { %s1716_s11 = smov (!%p385_p7, %s1089_s11), 31 }
  0x5f   : > { %s1090_s24 = sshll.u32 %s1716_s11, 2 }
  0x60   : > { %s1626_s17 = scalar_lea.vmem %s1689_s1, %s1090_s24 }
  0x64 PF: > { %v1277_v3 = vld [vmem:[%s1626_s17] sm:$0xff]   ;;  %v1453_v4 = vmov 0.0   ;;  %v1278_v5 = vld [vmem:[%s1626_s17 + $0x8] sm:$0xff]   ;;  %vm1454_vm0 = vmmov 0   ;;  %v1279_v6 = vld [vmem:[%s1626_s17 + $0x10] sm:$0xff]   ;;  %p1101_p13 = scmp.ne.s32.totalorder %s1436_s26, 1 }
  0x65   : > { %1166 = vmatprep.subr.bf16.mxu0 %v1453_v4  ;;  %1182 = vmatprep.mubr.msk.bf16.mxu0 %vm1454_vm0, %v1453_v4  ;;  %v1280_v7 = vld [vmem:[%s1626_s17 + $0x18] sm:$0xff]   ;;  %v1281_v8 = vld [vmem:[%s1626_s17 + $0x20] sm:$0xff]   ;;  %v1282_v9 = vld [vmem:[%s1626_s17 + $0x28] sm:$0xff]   ;;  %v1455_v22 = vmov (!%p1101_p13), 0.0   ;;  %vm1456_vm1 = vmmov (!%p1101_p13), 0  }
  0x66   : > { %1167 = vmatpush3.bf16.msra.mxu0 %v1277_v3  ;;  %v1283_v10 = vld [vmem:[%s1626_s17 + $0x30] sm:$0xff]   ;;  %v1284_v11 = vld [vmem:[%s1626_s17 + $0x38] sm:$0xff]   ;;  %v404_v13 = vld [vmem:[#allocation2] sm:$0xff] }
  0x67   : > { %1168 = vmatprep.subr.bf16.mxu0 %v1453_v4  ;;  %v1285_v12 = vld [vmem:[%s340_s10] sm:$0xff]   ;;  %v405_v15 = vld [vmem:[#allocation2 + $0x8] sm:$0xff]  ;;  %v1286_v21 = vld [vmem:[#allocation4] sm:$0xff] (!%p1101_p13)  }
  0x68   : > { %v1287_v23 = vld [vmem:[#allocation4 + $0x8] sm:$0xff] (!%p1101_p13)   ;;  %v1288_v24 = vld [vmem:[#allocation4 + $0x10] sm:$0xff] (!%p1101_p13)   ;;  %v1289_v26 = vld [vmem:[#allocation4 + $0x18] sm:$0xff] (!%p1101_p13)  }
  0x69   : > { %v1294_v25 = vld [vmem:[#allocation6 + $0x4] ss:$16 sps:$4 sm:$0xff] (!%p1101_p13)   ;;  %v1299_v29 = vld [vmem:[#allocation6] ss:$16 sps:$4 sm:$0xff] (!%p1101_p13)   ;;  %v1291_v35 = vld [vmem:[#allocation4 + $0x28] sm:$0xff] (!%p1101_p13)  }
  0x6a   : > { %1169 = vmatpush3.bf16.msra.mxu0 %v1278_v5  ;;  %878 = vmatprep.subr.bf16.mxu1 (!%p1101_p13), %v1294_v25  ;;  %v1290_v27 = vld [vmem:[#allocation4 + $0x20] sm:$0xff] (!%p1101_p13)   ;;  %v1292_v41 = vld [vmem:[#allocation4 + $0x30] sm:$0xff] (!%p1101_p13)   ;;  %v1293_v45 = vld [vmem:[#allocation4 + $0x38] sm:$0xff] (!%p1101_p13)  }
  0x6b   : > { %1170 = vmatprep.subr.bf16.mxu0 %v1453_v4  ;;  %v1300_v30 = vld [vmem:[#allocation6 + $0x24] ss:$16 sps:$4 sm:$0xff] (!%p1101_p13)   ;;  %v1102_v32 = vld [vmem:[%s1690_s2] ss:$0 sm:$0xff] (!%p1101_p13)  ;;  %879 = vmatpush1.bf16.msra.mxu1 (!%p1101_p13), %v1299_v29  ;;  %v1298_v46 = vld [vmem:[#allocation6 + $0xc] ss:$16 sps:$4 sm:$0xff] (!%p1101_p13)  }
  0x6c   : > { %880 = vmatprep.subr.bf16.mxu1 (!%p1101_p13), %v1300_v30  ;;  %v1305_v33 = vld [vmem:[#allocation6 + $0x20] ss:$16 sps:$4 sm:$0xff] (!%p1101_p13)   ;;  %v1306_v34 = vld [vmem:[#allocation6 + $0x44] ss:$16 sps:$4 sm:$0xff] (!%p1101_p13)   ;;  %v1296_v52 = vld [vmem:[#allocation6 + $0x8] ss:$16 sps:$4 sm:$0xff] (!%p1101_p13)  }
  0x6d   : > { %v1311_v38 = vld [vmem:[#allocation6 + $0x40] ss:$16 sps:$4 sm:$0xff] (!%p1101_p13)   ;;  %v1312_v39 = vld [vmem:[#allocation6 + $0x64] ss:$16 sps:$4 sm:$0xff] (!%p1101_p13)   ;;  %v1304_v54 = vld [vmem:[#allocation6 + $0x2c] ss:$16 sps:$4 sm:$0xff] (!%p1101_p13)  }
  0x6e   : > { %1171 = vmatpush3.bf16.msra.mxu0 %v1279_v6  ;;  %v1317_v43 = vld [vmem:[#allocation6 + $0x60] ss:$16 sps:$4 sm:$0xff] (!%p1101_p13)   ;;  %v1318_v44 = vld [vmem:[#allocation6 + $0x84] ss:$16 sps:$4 sm:$0xff] (!%p1101_p13)   ;;  %v1302_v55 = vld [vmem:[#allocation6 + $0x28] ss:$16 sps:$4 sm:$0xff] (!%p1101_p13)  }
  0x6f   : > { %1172 = vmatprep.subr.bf16.mxu0 %v1453_v4  ;;  %881 = vmatpush1.bf16.msra.mxu1 (!%p1101_p13), %v1305_v33  ;;  %v1323_v47 = vld [vmem:[#allocation6 + $0x80] ss:$16 sps:$4 sm:$0xff] (!%p1101_p13)   ;;  %v1324_v50 = vld [vmem:[#allocation6 + $0xa4] ss:$16 sps:$4 sm:$0xff] (!%p1101_p13)   ;;  %v1310_v56 = vld [vmem:[#allocation6 + $0x4c] ss:$16 sps:$4 sm:$0xff] (!%p1101_p13)  }
  0x70   : > { %882 = vmatprep.subr.bf16.mxu1 (!%p1101_p13), %v1306_v34  ;;  %v1329_v53 = vld [vmem:[#allocation6 + $0xa0] ss:$16 sps:$4 sm:$0xff] (!%p1101_p13)   ;;  %v1308_v57 = vld [vmem:[#allocation6 + $0x48] ss:$16 sps:$4 sm:$0xff] (!%p1101_p13)   ;;  %v1316_v58 = vld [vmem:[#allocation6 + $0x6c] ss:$16 sps:$4 sm:$0xff] (!%p1101_p13)  }
  0x71   : > { %v1314_v59 = vld [vmem:[#allocation6 + $0x68] ss:$16 sps:$4 sm:$0xff] (!%p1101_p13)   ;;  %v1322_v60 = vld [vmem:[#allocation6 + $0x8c] ss:$16 sps:$4 sm:$0xff] (!%p1101_p13)   ;;  %v1330_v0 = vld [vmem:[#allocation6 + $0xc4] ss:$16 sps:$4 sm:$0xff] (!%p1101_p13)  }
  0x72   : > { %1173 = vmatpush3.bf16.msra.mxu0 %v1280_v7  ;;  %v1320_v61 = vld [vmem:[#allocation6 + $0x88] ss:$16 sps:$4 sm:$0xff] (!%p1101_p13)   ;;  %v1328_v62 = vld [vmem:[#allocation6 + $0xac] ss:$16 sps:$4 sm:$0xff] (!%p1101_p13)   ;;  %v1335_v3 = vld [vmem:[#allocation6 + $0xc0] ss:$16 sps:$4 sm:$0xff] (!%p1101_p13)  }
  0x73   : > { %1174 = vmatprep.subr.bf16.mxu0 %v1453_v4  ;;  %883 = vmatpush1.bf16.msra.mxu1 (!%p1101_p13), %v1311_v38  ;;  %v1326_v63 = vld [vmem:[#allocation6 + $0xa8] ss:$16 sps:$4 sm:$0xff] (!%p1101_p13)   ;;  %v1334_v1 = vld [vmem:[#allocation6 + $0xcc] ss:$16 sps:$4 sm:$0xff] (!%p1101_p13)   ;;  %v1341_v7 = vld [vmem:[#allocation6 + $0xe0] ss:$16 sps:$4 sm:$0xff] (!%p1101_p13)  }
  0x74   : > { %884 = vmatprep.subr.bf16.mxu1 (!%p1101_p13), %v1312_v39  ;;  %v1332_v2 = vld [vmem:[#allocation6 + $0xc8] ss:$16 sps:$4 sm:$0xff] (!%p1101_p13)   ;;  %v1340_v5 = vld [vmem:[#allocation6 + $0xec] ss:$16 sps:$4 sm:$0xff] (!%p1101_p13)   ;;  %v696_v25 = vld [vmem:[%s1694_s6] sm:$0xf] (!%p1101_p13) }
  0x75   : > { %v1338_v6 = vld [vmem:[#allocation6 + $0xe8] ss:$16 sps:$4 sm:$0xff] (!%p1101_p13)  }
  0x76   : > { %1175 = vmatpush3.bf16.msra.mxu0 %v1281_v8  ;;  %v1457_v8 = vmov (!%p1101_p13), 0  }
  0x77   : > { %1176 = vmatprep.subr.bf16.mxu0 %v1453_v4  ;;  %885 = vmatpush1.bf16.msra.mxu1 (!%p1101_p13), %v1317_v43 }
  0x78   : > { %886 = vmatprep.subr.bf16.mxu1 (!%p1101_p13), %v1318_v44  ;;  %910 = vmatprep.mubr.bf16.mxu1 (!%p1101_p13), %v1457_v8 }
  0x7a   : > { %1177 = vmatpush3.bf16.msra.mxu0 %v1282_v9  ;;  %v1103_v9 = vld [vmem:[%s1692_s4] ss:$0 sm:$0xff] (!%p1101_p13) }
  0x7b   : > { %1178 = vmatprep.subr.bf16.mxu0 %v1453_v4  ;;  %887 = vmatpush1.bf16.msra.mxu1 (!%p1101_p13), %v1323_v47 }
  0x7c   : > { %888 = vmatprep.subr.bf16.mxu1 (!%p1101_p13), %v1324_v50 }
  0x7e   : > { %1179 = vmatpush3.bf16.msra.mxu0 %v1283_v10 }
  0x7f   : > { %1180 = vmatprep.subr.bf16.mxu0 %v1453_v4  ;;  %889 = vmatpush1.bf16.msra.mxu1 (!%p1101_p13), %v1329_v53  ;;  %v1336_v4 = vld [vmem:[#allocation6 + $0xe4] ss:$16 sps:$4 sm:$0xff] (!%p1101_p13)  }
  0x80   : > { %890 = vmatprep.subr.bf16.mxu1 (!%p1101_p13), %v1330_v0 }
  0x82   : > { %1181 = vmatpush3.bf16.msra.mxu0 %v1284_v11 }
  0x83   : > { %1186 = vmatprep.subr.bf16.mxu0 (!%p1101_p13), %v1455_v22  ;;  %891 = vmatpush1.bf16.msra.mxu1 (!%p1101_p13), %v1335_v3 }
  0x84   : > { %892 = vmatprep.subr.bf16.mxu1 (!%p1101_p13), %v1336_v4 }
  0x85   : > { %1183 = vmatmul.mubr.bf16.vlgmr.msra.gmra.mrb[0].mxu0 %v1285_v12 }
  0x86   : > { %1187 = vmatpush3.bf16.msra.mxu0 (!%p1101_p13), %v1286_v21  ;;  %1202 = vmatprep.mubr.msk.bf16.mxu0 (!%p1101_p13), %vm1456_vm1, %v1455_v22  ;;  %v698_v21 = vlaneseq (!%p1101_p13) }
  0x87   : > { %1188 = vmatprep.subr.bf16.mxu0 (!%p1101_p13), %v1455_v22  ;;  %893 = vmatpush1.bf16.msra.mxu1 (!%p1101_p13), %v1341_v7 }
  0x8a   : > { %1189 = vmatpush3.bf16.msra.mxu0 (!%p1101_p13), %v1287_v23 }
  0x8b   : > { %1190 = vmatprep.subr.bf16.mxu0 (!%p1101_p13), %v1455_v22 }
  0x8e   : > { %1191 = vmatpush3.bf16.msra.mxu0 (!%p1101_p13), %v1288_v24 }
  0x8f   : > { %1192 = vmatprep.subr.bf16.mxu0 (!%p1101_p13), %v1455_v22 }
  0x92   : > { %1193 = vmatpush3.bf16.msra.mxu0 (!%p1101_p13), %v1289_v26 }
  0x93   : > { %1194 = vmatprep.subr.bf16.mxu0 (!%p1101_p13), %v1455_v22 }
  0x96   : > { %1195 = vmatpush3.bf16.msra.mxu0 (!%p1101_p13), %v1290_v27 }
  0x97   : > { %1196 = vmatprep.subr.bf16.mxu0 (!%p1101_p13), %v1455_v22 }
  0x9a   : > { %1197 = vmatpush3.bf16.msra.mxu0 (!%p1101_p13), %v1291_v35 }
  0x9b   : > { %1198 = vmatprep.subr.bf16.mxu0 (!%p1101_p13), %v1455_v22 }
  0x9e   : > { %1199 = vmatpush3.bf16.msra.mxu0 (!%p1101_p13), %v1292_v41 }
  0x9f   : > { %1200 = vmatprep.subr.bf16.mxu0 (!%p1101_p13), %v1455_v22  ;;  %v699_v22 = vshrl.u32 (!%p1101_p13), %v698_v21, 7 }
  0xa1   : > { %v700_v23 = vsub.s32 (!%p1101_p13), 0, %v699_v22  ;;  %v708_v24 = vsub.s32 (!%p1101_p13), 2, %v699_v22  ;;  %v704_v26 = vsub.s32 (!%p1101_p13), 1, %v699_v22  ;;  %v712_v27 = vsub.s32 (!%p1101_p13), 3, %v699_v22 }
  0xa2   : > { %1201 = vmatpush3.bf16.msra.mxu0 (!%p1101_p13), %v1293_v45 }
  0xa3   : > { %921 = vmatprep.subr.bf16.mxu0 (!%p1101_p13), %v1298_v46  ;;  %v709_v29 = vrot.slane (!%p1101_p13), %v696_v25, %v708_v24  ;;  %v705_v30 = vrot.slane (!%p1101_p13), %v696_v25, %v704_v26 }
 0x157   : > { %526 = sbr.rel (%p1101_p13) target bundleno = 803 (0x323), region = 105 }
 0x158   : > { %v512_v14 = vpop.f32.mrb[0].mxu0 }
 0x159   : > { %v519_v16 = vadd.f32 %v512_v14, %v404_v13  ;;  %v1184_v17 = vpop.f32.mrb[1].mxu0 }
 0x15a   : > { %v515_v18 = vpop.f32.mrb[2].mxu0 }
 0x15b   : > { %521 = vst [vmem:[#allocation2] sm:$0xff] %v519_v16  ;;  %v520_v19 = vadd.f32 %v515_v18, %v405_v15  ;;  %v1185_v20 = vpop.f32.mrb[3].mxu0 }
 0x15d   : > { %522 = vst [vmem:[#allocation2 + $0x8] sm:$0xff] %v520_v19 }
 0x162   : > { %v527_v28 = vld [vmem:[#allocation2] sm:$0xff] }
 0x163   : > { %v536_v36 = vadd.f32 %v1102_v32, %v527_v28  ;;  %v701_v28 = vrot.slane %v696_v25, %v700_v23 }
 0x164   : > { %v528_v31 = vld [vmem:[#allocation2 + $0x8] sm:$0xff] }
 0x165   : > { %v537_v37 = vadd.f32 %v1102_v32, %v528_v31  ;;  %v540_v40 = vmul.f32 0.01, %v536_v36  ;;  %vm538_vm2 = vcmp.gt.f32.partialorder %v536_v36, 0.0  ;;  %v713_v31 = vrot.slane %v696_v25, %v712_v27 }
 0x167   : > { %v541_v42 = vmul.f32 0.01, %v537_v37  ;;  %vm539_vm3 = vcmp.gt.f32.partialorder %v537_v37, 0.0  ;;  %v542_v48 = vsel %vm538_vm2, %v536_v36, %v540_v40 }
 0x169   : > { %v543_v49 = vsel %vm539_vm3, %v537_v37, %v541_v42 }
 0x16a   : > { %v544_v51 = vpack.c.bf16 %v543_v49, %v542_v48 }
 0x16c   : > { %1203 = vmatmul.mubr.bf16.vlgmr.msra.gmra.mrb[0].mxu0 %v544_v51 }
 0x16d   : > { %922 = vmatpush1.bf16.msra.mxu0 %v1296_v52  ;;  %953 = vmatprep.mubr.bf16.mxu0 %v1457_v8 }
 0x16e   : > { %923 = vmatprep.subr.bf16.mxu0 %v1304_v54 }
 0x171   : > { %924 = vmatpush1.bf16.msra.mxu0 %v1302_v55 }
 0x172   : > { %925 = vmatprep.subr.bf16.mxu0 %v1310_v56 }
 0x175   : > { %926 = vmatpush1.bf16.msra.mxu0 %v1308_v57 }
 0x176   : > { %927 = vmatprep.subr.bf16.mxu0 %v1316_v58 }
 0x179   : > { %928 = vmatpush1.bf16.msra.mxu0 %v1314_v59 }
 0x17a   : > { %929 = vmatprep.subr.bf16.mxu0 %v1322_v60 }
 0x17d   : > { %930 = vmatpush1.bf16.msra.mxu0 %v1320_v61 }
 0x17e   : > { %931 = vmatprep.subr.bf16.mxu0 %v1328_v62 }
 0x181   : > { %932 = vmatpush1.bf16.msra.mxu0 %v1326_v63 }
 0x182   : > { %933 = vmatprep.subr.bf16.mxu0 %v1334_v1 }
 0x185   : > { %934 = vmatpush1.bf16.msra.mxu0 %v1332_v2 }
 0x186   : > { %935 = vmatprep.subr.bf16.mxu0 %v1340_v5 }
 0x189   : > { %936 = vmatpush1.bf16.msra.mxu0 %v1338_v6 }
 0x23f   : > { %v650_v10 = vpop.f32.mrb[0].mxu0 }
 0x240   : > { %v651_v11 = vadd.f32 %v1103_v9, %v650_v10  ;;  %v1204_v12 = vpop.f32.mrb[1].mxu0 }
 0x241   : > { %v653_v13 = vpop.f32.mrb[2].mxu0 }
 0x242   : > { %v659_v14 = vmul.f32 0.01, %v651_v11  ;;  %v654_v15 = vadd.f32 %v1103_v9, %v653_v13  ;;  %v1205_v16 = vpop.f32.mrb[3].mxu0  ;;  %vm657_vm4 = vcmp.gt.f32.partialorder %v651_v11, 0.0 }
 0x244   : > { %vm658_vm5 = vcmp.gt.f32.partialorder %v654_v15, 0.0  ;;  %v660_v17 = vmul.f32 0.01, %v654_v15  ;;  %v661_v18 = vsel %vm657_vm4, %v651_v11, %v659_v14 }
 0x246   : > { %v662_v19 = vsel %vm658_vm5, %v654_v15, %v660_v17 }
 0x247   : > { %v663_v20 = vpack.c.bf16 %v662_v19, %v661_v18 }
 0x249   : > { %911 = vmatmul.mubr.bf16.vlgmr.msra.gmra.mrb[0].mxu1 %v663_v20  ;;  %954 = vmatmul.mubr.bf16.vlgmr.msra.gmra.mrb[4].mxu0 %v663_v20 }
 0x31c   : > { %v912_v32 = vpop.f32.mrb[0].mxu1  ;;  %v955_v33 = vpop.f32.mrb[4].mxu0 }
 0x31d   : > { %v913_v34 = vadd.f32 %v912_v32, %v701_v28  ;;  %v956_v35 = vadd.f32 %v955_v33, %v709_v29  ;;  %v914_v36 = vpop.f32.mrb[1].mxu1  ;;  %v957_v37 = vpop.f32.mrb[5].mxu0 }
 0x31e   : > { %v915_v38 = vadd.f32 %v914_v36, %v705_v30  ;;  %v958_v39 = vadd.f32 %v957_v37, %v713_v31  ;;  %v916_v40 = vpop.f32.mrb[2].mxu1  ;;  %v959_v41 = vpop.f32.mrb[6].mxu0 }
 0x31f   : > { %964 = vst [vmem:[%s1695_s7] sm:$0xff] %v913_v34  ;;  %966 = vst [vmem:[%s1695_s7 + $0x10] sm:$0xff] %v956_v35  ;;  %v917_v42 = vadd.f32 %v916_v40, %v701_v28  ;;  %v960_v43 = vadd.f32 %v959_v41, %v709_v29  ;;  %v918_v44 = vpop.f32.mrb[3].mxu1  ;;  %v961_v45 = vpop.f32.mrb[7].mxu0 }
 0x320   : > { %965 = vst [vmem:[%s1695_s7 + $0x8] sm:$0xff] %v915_v38  ;;  %967 = vst [vmem:[%s1695_s7 + $0x18] sm:$0xff] %v958_v39  ;;  %v919_v46 = vadd.f32 %v918_v44, %v705_v30  ;;  %v962_v47 = vadd.f32 %v961_v45, %v713_v31 }
 0x321   : > { %968 = vst [vmem:[%s1695_s7 + $0x20] sm:$0xff] %v917_v42  ;;  %970 = vst [vmem:[%s1695_s7 + $0x30] sm:$0xff] %v960_v43 }
 0x322   : > { %969 = vst [vmem:[%s1695_s7 + $0x28] sm:$0xff] %v919_v46  ;;  %971 = vst [vmem:[%s1695_s7 + $0x38] sm:$0xff] %v962_v47 }
 0x323 PF: > { %s19_s28 = sadd.s32 1, %s1444_s28   ;;  %s1708_s19 = sld [smem:[#allocation10_spill]] }
 0x324   : > { %p16_p0 = scmp.ge.s32.totalorder %s19_s28, 4   ;;  %s1709_s24 = smov %s1432_s25 }
 0x325   : > { %s1710_s25 = smov %s1548_s13  ;;  %s1711_s26 = smov %s1440_s27 }
 0x326   :  { %18 = sbr.rel (!%p16_p0) target bundleno = 4 (0x4), region = 144 }
 0x329   : > { %s1712_s27 = smov %s1708_s19 }
 0x32d   :  { %996 = vsyncpa [#allocation5], 1 }
 0x32e   :  { %998 = vsyncpa [#allocation5 + $0x1], 1 }
 0x32f   :  { %999 = vsyncpa [#allocation7], 1 }

// kernel: multitask_dnn_forward.1
= control target key start
LH: loop header
LB: loop body
LE: loop exit
PB: predicated region body
PF: predicated region fallthrough
CT: control target
= control target key end

     0   :  { %12 = vsyncpa [#allocation5], 0  ;;  %s1688_s0 = inlined_call_operand.vmem [shape: bf16[16,256], index: 0, kind: input, shape index: {}]   ;;  %s1689_s1 = inlined_call_operand.vmem [shape: bf16[256,128], index: 1, kind: input, shape index: {}]   ;;  %s1690_s2 = inlined_call_operand.vmem [shape: f32[1,128], index: 2, kind: input, shape index: {}]   ;;  %s1691_s3 = inlined_call_operand.hbm [shape: bf16[128,128], index: 3, kind: input, shape index: {}]   ;;  %s1692_s4 = inlined_call_operand.vmem [shape: f32[1,128], index: 4, kind: input, shape index: {}]   ;;  %s1693_s5 = inlined_call_operand.hbm [shape: bf16[128,512], index: 5, kind: input, shape index: {}]   ;;  %s1694_s6 = inlined_call_operand.vmem [shape: f32[1,512], index: 6, kind: input, shape index: {}]   ;;  %s1695_s7 = inlined_call_operand.vmem [shape: f32[16,512], index: 7, kind: output, shape index: {}]  }
   0x1   :  { %13 = vsyncpa [#allocation7], 0  ;;  %s1498_s24 = smov 0   ;;  %s1500_s25 = smov 0  }
   0x2   :  { %s1502_s26 = smov 0   ;;  %s1504_s27 = smov 0  }
   0x3   :  { %s1506_s28 = smov 0  }
   0x4 LB: > { %s1078_s29 = sadd.s32 4294967295, %s1444_s28   ;;  %s28_s30 = sadd.s32 1, %s1440_s27  ;;  %s1444_s28 = sphi %s1506_s28, %s19_s28   ;;  %s1440_s27 = sphi %s1504_s27, %s1712_s27   ;;  %s1436_s26 = sphi %s1502_s26, %s1711_s26   ;;  %s1432_s25 = sphi %s1500_s25, %s1710_s25   ;;  %s1428_s24 = sphi %s1498_s24, %s1709_s24  }
   0x5   : > { %p29_p0 = scmp.ge.s32.totalorder %s28_s30, 2  ;;  %s40_s8 = sadd.s32 1, %s1432_s25 }
   0x6   : > { %p47_p1 = scmp.ne.s32.totalorder %s1432_s25, %s1428_s24  ;;  %p48_p2 = scmp.eq.s32.totalorder %s1444_s28, 0 }
   0x7   : > { %s1714_s30 = smov (%p29_p0, %s28_s30), 0  ;;  %p1079_p4 = scmp.ge.s32.totalorder %s1444_s28, 1 }
   0x8   : > { %1700 = sst [smem:[#allocation10_spill]] %s1714_s30  ;;  %p1531_p3 = por %p48_p2, %p47_p1 }
   0x9   : > { %s36_s10 = ssub.s32 %s1440_s27, %s1714_s30  ;;  %p221_p5 = scmp.lt.s32.totalorder %s1444_s28, 3 }
   0xa   : > { %s1701_s9 = scalar_select %p1531_p3, 1, 0 }
   0xb   : > { %p38_p6 = scmp.eq.s32.totalorder %s36_s10, 0  ;;  %p1539_p7 = pnand %p1079_p4, %p221_p5 }
   0xc   : > { %p1543_p8 = scmp.eq.s32.totalorder %s1078_s29, 0  ;;  %s1446_s14 = smov [#allocation4]  }
   0xd   : > { %s1702_s11 = scalar_select %p1539_p7, 1, 0 }
   0xe   : > { %s1703_s12 = scalar_select %p1543_p8, 1, 0 }
   0xf   : > { %s1548_s13 = scalar_select %p38_p6, %s1432_s25, %s40_s8  }
  0x10   : > { %p1214_p9 = pneg %p1539_p7  ;;  %s236_s15 = sshll.u32 %s1446_s14, 4  ;;  %s237_s15 = int_to_ptr.vmem [resolvable:$true] %s236_s15 }
  0x11   : > { %s1447_s17 = smov [#allocation6]   ;;  %s1342_s21 = scalar_lea.hbm %s1691_s3, 1024 }
  0x12   : > { %p1554_p10 = pnand %p1543_p8, %p1214_p9  ;;  %s252_s18 = sshll.u32 %s1447_s17, 4  ;;  %s253_s18 = int_to_ptr.vmem [resolvable:$true] %s252_s18 }
  0x13   : > { %p1343_p11 = scmp.ne.s32.totalorder %s1691_s3, %s1342_s21  ;;  %p1349_p1 = scmp.lt.u32.totalorder %s1342_s21, %s1691_s3 }
  0x14   : > { %p1344_p12 = pneg %p1554_p10 }
  0x16   : > { %p1345_p13 = pnand %p1344_p12, %p1343_p11 }
  0x18   : > { %p1346_p0 = pneg %p1345_p13 }
  0x1a   : > { %p1351_p2 = pnand %p1349_p1, %p1346_p0 }
  0x1c   : > { %1354 = shalt.err (!%p1351_p2)
}
  0x1d   : > { %s1355_s10 = scalar_lea.vmem %s237_s15, 1024  ;;  %p1363_p9 = scmp.lt.s32.totalorder %s237_s15, %s237_s15 }
  0x1e   : > { %p1356_p4 = scmp.ne.s32.totalorder %s237_s15, %s1355_s10  ;;  %p1364_p8 = scmp.lt.s32.totalorder %s1355_s10, %s1355_s10 }
  0x20   : > { %p1358_p5 = pnand %p1356_p4, %p1344_p12  ;;  %p1365_p7 = por %p1364_p8, %p1363_p9 }
  0x22   : > { %p1359_p6 = pneg %p1358_p5 }
  0x24   : > { %p1366_p3 = pnand %p1365_p7, %p1359_p6 }
  0x26   : > { %1369 = shalt.err (!%p1366_p3)
}
  0x27   : > { %s1448_s14 = smov 64   ;;  %s1449_s17 = smov 4  }
  0x28   : > { %1217 = dma.hbm_to_vmem [thread:$0]  (!%p1554_p10), %s1691_s3, 1024, %s237_s15, [#allocation5], %s1448_s14, %s1448_s14, %s1449_s17  }
  0x29   : > { %s1370_s23 = scalar_lea.hbm %s1693_s5, 4096 }
  0x2a   : > { %p1371_p8 = scmp.ne.s32.totalorder %s1693_s5, %s1370_s23  ;;  %p1377_p11 = scmp.lt.u32.totalorder %s1370_s23, %s1693_s5 }
  0x2c   : > { %p1373_p3 = pnand %p1371_p8, %p1344_p12 }
  0x2e   : > { %p1374_p7 = pneg %p1373_p3 }
  0x30   : > { %p1379_p13 = pnand %p1377_p11, %p1374_p7 }
  0x32   : > { %1382 = shalt.err (!%p1379_p13)
}
  0x33   : > { %s1383_s15 = scalar_lea.vmem %s253_s18, 4096  ;;  %p1391_p4 = scmp.lt.s32.totalorder %s253_s18, %s253_s18 }
  0x34   : > { %p1384_p0 = scmp.ne.s32.totalorder %s253_s18, %s1383_s15  ;;  %p1392_p5 = scmp.lt.s32.totalorder %s1383_s15, %s1383_s15 }
  0x36   : > { %p1386_p1 = pnand %p1384_p0, %p1344_p12  ;;  %p1393_p6 = por %p1392_p5, %p1391_p4 }
  0x38   : > { %p1387_p2 = pneg %p1386_p1 }
  0x3a   : > { %p1394_p9 = pnand %p1393_p6, %p1387_p2 }
  0x3c   : > { %1397 = shalt.err (!%p1394_p9)
}
  0x3d   : > { %s1450_s14 = smov 256   ;;  %s1451_s17 = smov 16  }
  0x3e   : > { %1220 = dma.hbm_to_vmem [thread:$0]  (!%p1554_p10), %s1693_s5, 4096, %s253_s18, [#allocation7], %s1450_s14, %s1450_s14, %s1451_s17  }
  0x3f   : > { %p1082_p8 = scmp.ge.s32.totalorder %s1444_s28, 2 }
  0x40   : > { %p1705_p3 = scmp.ne.s32.totalorder (!%p1082_p8), %s1701_s9, 0 }
  0x41   : > { %265 = sbr.rel (%p1082_p8) target bundleno = 79 (0x4f), region = 36 }
  0x48   : > { %268 = sbr.rel (!%p1705_p3) target bundleno = 79 (0x4f), region = 40  ;;  %s270_s20 = sand.u32 (%p1705_p3), 1, %s1432_s25  }
  0x49   : > { %s1084_s21 = sshll.u32 (%p1705_p3), %s1440_s27, 2  ;;  %s1083_s22 = sshll.u32 (%p1705_p3), %s270_s20, 3 }
  0x4a   : > { %s277_s8 = scalar_lea.vmem (%p1705_p3), %s1688_s0, %s1084_s21  ;;  %s272_s16 = scalar_lea.vmem (%p1705_p3), [#allocation3], %s1083_s22 }
  0x4b   : > { %v293_v0 = vld [vmem:[%s277_s8] sm:$0xf] (%p1705_p3)  ;;  %v295_v1 = vld [vmem:[%s277_s8 + $0x8] sm:$0xf] (%p1705_p3) }
  0x4c   : > { %294 = vst [vmem:[%s272_s16] sm:$0xf] (%p1705_p3), %v293_v0  ;;  %296 = vst [vmem:[%s272_s16 + $0x4] sm:$0xf] (%p1705_p3), %v295_v1 }
  0x4f PF: > { %p1706_p10 = scmp.ne.s32.totalorder %s1702_s11, 0 }
  0x50   : > { %s338_s9 = sand.u32 (!%p1706_p10), 1, %s1428_s24   ;;  %p1707_p12 = scmp.ne.s32.totalorder (!%p1706_p10), %s1703_s12, 0 }
  0x51   : > { %335 = sbr.rel (%p1706_p10) target bundleno = 803 (0x323), region = 85  ;;  %s1611_s18 = sshll.u32 (!%p1706_p10), %s338_s9, 3 }
  0x52   : > { %s340_s10 = scalar_lea.vmem (!%p1706_p10), [#allocation3], %s1611_s18 }
  0x58   : > { %1419 = dma.done.wait (%p1707_p12), [#allocation5], 1024  }
  0x59   : > { %1421 = vsyncadd (%p1707_p12), [#allocation5], 4294966272 }
  0x5a   : > { %1423 = dma.done.wait (%p1707_p12), [#allocation7], 4096  }
  0x5b   : > { %1425 = vsyncadd (%p1707_p12), [#allocation7], 4294963200  ;;  %s1089_s11 = sshll.u32 %s1436_s26, 4  ;;  %p1091_p11 = scmp.ne.s32.totalorder %s1436_s26, 0 }
  0x5c   : > { %p385_p7 = scmp.lt.s32.totalorder %s1089_s11, 31  ;;  %v1452_v2 = vmov (!%p1091_p11), 0.0  }
  0x5d   : > { %401 = sbr.rel (%p1091_p11) target bundleno = 100 (0x64), region = 101  ;;  %402 = vst [vmem:[#allocation2] sm:$0xff] (!%p1091_p11), %v1452_v2  ;;  %403 = vst [vmem:[#allocation2 + $0x8] sm:$0xff] (!%p1091_p11), %v1452_v2 }
  0x5e   : > { %s1716_s11 = smov (!%p385_p7, %s1089_s11), 31 }
  0x5f   : > { %s1090_s24 = sshll.u32 %s1716_s11, 2 }
  0x60   : > { %s1626_s17 = scalar_lea.vmem %s1689_s1, %s1090_s24 }
  0x64 PF: > { %v1277_v3 = vld [vmem:[%s1626_s17] sm:$0xff]   ;;  %v1453_v4 = vmov 0.0   ;;  %v1278_v5 = vld [vmem:[%s1626_s17 + $0x8] sm:$0xff]   ;;  %vm1454_vm0 = vmmov 0   ;;  %v1279_v6 = vld [vmem:[%s1626_s17 + $0x10] sm:$0xff]   ;;  %p1101_p13 = scmp.ne.s32.totalorder %s1436_s26, 1 }
  0x65   : > { %1166 = vmatprep.subr.bf16.mxu0 %v1453_v4  ;;  %1182 = vmatprep.mubr.msk.bf16.mxu0 %vm1454_vm0, %v1453_v4  ;;  %v1280_v7 = vld [vmem:[%s1626_s17 + $0x18] sm:$0xff]   ;;  %v1281_v8 = vld [vmem:[%s1626_s17 + $0x20] sm:$0xff]   ;;  %v1282_v9 = vld [vmem:[%s1626_s17 + $0x28] sm:$0xff]   ;;  %v1455_v22 = vmov (!%p1101_p13), 0.0   ;;  %vm1456_vm1 = vmmov (!%p1101_p13), 0  }
  0x66   : > { %1167 = vmatpush3.bf16.msra.mxu0 %v1277_v3  ;;  %v1283_v10 = vld [vmem:[%s1626_s17 + $0x30] sm:$0xff]   ;;  %v1284_v11 = vld [vmem:[%s1626_s17 + $0x38] sm:$0xff]   ;;  %v404_v13 = vld [vmem:[#allocation2] sm:$0xff] }
  0x67   : > { %1168 = vmatprep.subr.bf16.mxu0 %v1453_v4  ;;  %v1285_v12 = vld [vmem:[%s340_s10] sm:$0xff]   ;;  %v405_v15 = vld [vmem:[#allocation2 + $0x8] sm:$0xff]  ;;  %v1286_v21 = vld [vmem:[#allocation4] sm:$0xff] (!%p1101_p13)  }
  0x68   : > { %v1287_v23 = vld [vmem:[#allocation4 + $0x8] sm:$0xff] (!%p1101_p13)   ;;  %v1288_v24 = vld [vmem:[#allocation4 + $0x10] sm:$0xff] (!%p1101_p13)   ;;  %v1289_v26 = vld [vmem:[#allocation4 + $0x18] sm:$0xff] (!%p1101_p13)  }
  0x69   : > { %v1294_v25 = vld [vmem:[#allocation6 + $0x4] ss:$16 sps:$4 sm:$0xff] (!%p1101_p13)   ;;  %v1299_v29 = vld [vmem:[#allocation6] ss:$16 sps:$4 sm:$0xff] (!%p1101_p13)   ;;  %v1291_v35 = vld [vmem:[#allocation4 + $0x28] sm:$0xff] (!%p1101_p13)  }
  0x6a   : > { %1169 = vmatpush3.bf16.msra.mxu0 %v1278_v5  ;;  %878 = vmatprep.subr.bf16.mxu1 (!%p1101_p13), %v1294_v25  ;;  %v1290_v27 = vld [vmem:[#allocation4 + $0x20] sm:$0xff] (!%p1101_p13)   ;;  %v1292_v41 = vld [vmem:[#allocation4 + $0x30] sm:$0xff] (!%p1101_p13)   ;;  %v1293_v45 = vld [vmem:[#allocation4 + $0x38] sm:$0xff] (!%p1101_p13)  }
  0x6b   : > { %1170 = vmatprep.subr.bf16.mxu0 %v1453_v4  ;;  %v1300_v30 = vld [vmem:[#allocation6 + $0x24] ss:$16 sps:$4 sm:$0xff] (!%p1101_p13)   ;;  %v1102_v32 = vld [vmem:[%s1690_s2] ss:$0 sm:$0xff] (!%p1101_p13)  ;;  %879 = vmatpush1.bf16.msra.mxu1 (!%p1101_p13), %v1299_v29  ;;  %v1298_v46 = vld [vmem:[#allocation6 + $0xc] ss:$16 sps:$4 sm:$0xff] (!%p1101_p13)  }
  0x6c   : > { %880 = vmatprep.subr.bf16.mxu1 (!%p1101_p13), %v1300_v30  ;;  %v1305_v33 = vld [vmem:[#allocation6 + $0x20] ss:$16 sps:$4 sm:$0xff] (!%p1101_p13)   ;;  %v1306_v34 = vld [vmem:[#allocation6 + $0x44] ss:$16 sps:$4 sm:$0xff] (!%p1101_p13)   ;;  %v1296_v52 = vld [vmem:[#allocation6 + $0x8] ss:$16 sps:$4 sm:$0xff] (!%p1101_p13)  }
  0x6d   : > { %v1311_v38 = vld [vmem:[#allocation6 + $0x40] ss:$16 sps:$4 sm:$0xff] (!%p1101_p13)   ;;  %v1312_v39 = vld [vmem:[#allocation6 + $0x64] ss:$16 sps:$4 sm:$0xff] (!%p1101_p13)   ;;  %v1304_v54 = vld [vmem:[#allocation6 + $0x2c] ss:$16 sps:$4 sm:$0xff] (!%p1101_p13)  }
  0x6e   : > { %1171 = vmatpush3.bf16.msra.mxu0 %v1279_v6  ;;  %v1317_v43 = vld [vmem:[#allocation6 + $0x60] ss:$16 sps:$4 sm:$0xff] (!%p1101_p13)   ;;  %v1318_v44 = vld [vmem:[#allocation6 + $0x84] ss:$16 sps:$4 sm:$0xff] (!%p1101_p13)   ;;  %v1302_v55 = vld [vmem:[#allocation6 + $0x28] ss:$16 sps:$4 sm:$0xff] (!%p1101_p13)  }
  0x6f   : > { %1172 = vmatprep.subr.bf16.mxu0 %v1453_v4  ;;  %881 = vmatpush1.bf16.msra.mxu1 (!%p1101_p13), %v1305_v33  ;;  %v1323_v47 = vld [vmem:[#allocation6 + $0x80] ss:$16 sps:$4 sm:$0xff] (!%p1101_p13)   ;;  %v1324_v50 = vld [vmem:[#allocation6 + $0xa4] ss:$16 sps:$4 sm:$0xff] (!%p1101_p13)   ;;  %v1310_v56 = vld [vmem:[#allocation6 + $0x4c] ss:$16 sps:$4 sm:$0xff] (!%p1101_p13)  }
  0x70   : > { %882 = vmatprep.subr.bf16.mxu1 (!%p1101_p13), %v1306_v34  ;;  %v1329_v53 = vld [vmem:[#allocation6 + $0xa0] ss:$16 sps:$4 sm:$0xff] (!%p1101_p13)   ;;  %v1308_v57 = vld [vmem:[#allocation6 + $0x48] ss:$16 sps:$4 sm:$0xff] (!%p1101_p13)   ;;  %v1316_v58 = vld [vmem:[#allocation6 + $0x6c] ss:$16 sps:$4 sm:$0xff] (!%p1101_p13)  }
  0x71   : > { %v1314_v59 = vld [vmem:[#allocation6 + $0x68] ss:$16 sps:$4 sm:$0xff] (!%p1101_p13)   ;;  %v1322_v60 = vld [vmem:[#allocation6 + $0x8c] ss:$16 sps:$4 sm:$0xff] (!%p1101_p13)   ;;  %v1330_v0 = vld [vmem:[#allocation6 + $0xc4] ss:$16 sps:$4 sm:$0xff] (!%p1101_p13)  }
  0x72   : > { %1173 = vmatpush3.bf16.msra.mxu0 %v1280_v7  ;;  %v1320_v61 = vld [vmem:[#allocation6 + $0x88] ss:$16 sps:$4 sm:$0xff] (!%p1101_p13)   ;;  %v1328_v62 = vld [vmem:[#allocation6 + $0xac] ss:$16 sps:$4 sm:$0xff] (!%p1101_p13)   ;;  %v1335_v3 = vld [vmem:[#allocation6 + $0xc0] ss:$16 sps:$4 sm:$0xff] (!%p1101_p13)  }
  0x73   : > { %1174 = vmatprep.subr.bf16.mxu0 %v1453_v4  ;;  %883 = vmatpush1.bf16.msra.mxu1 (!%p1101_p13), %v1311_v38  ;;  %v1326_v63 = vld [vmem:[#allocation6 + $0xa8] ss:$16 sps:$4 sm:$0xff] (!%p1101_p13)   ;;  %v1334_v1 = vld [vmem:[#allocation6 + $0xcc] ss:$16 sps:$4 sm:$0xff] (!%p1101_p13)   ;;  %v1341_v7 = vld [vmem:[#allocation6 + $0xe0] ss:$16 sps:$4 sm:$0xff] (!%p1101_p13)  }
  0x74   : > { %884 = vmatprep.subr.bf16.mxu1 (!%p1101_p13), %v1312_v39  ;;  %v1332_v2 = vld [vmem:[#allocation6 + $0xc8] ss:$16 sps:$4 sm:$0xff] (!%p1101_p13)   ;;  %v1340_v5 = vld [vmem:[#allocation6 + $0xec] ss:$16 sps:$4 sm:$0xff] (!%p1101_p13)   ;;  %v696_v25 = vld [vmem:[%s1694_s6] sm:$0xf] (!%p1101_p13) }
  0x75   : > { %v1338_v6 = vld [vmem:[#allocation6 + $0xe8] ss:$16 sps:$4 sm:$0xff] (!%p1101_p13)  }
  0x76   : > { %1175 = vmatpush3.bf16.msra.mxu0 %v1281_v8  ;;  %v1457_v8 = vmov (!%p1101_p13), 0  }
  0x77   : > { %1176 = vmatprep.subr.bf16.mxu0 %v1453_v4  ;;  %885 = vmatpush1.bf16.msra.mxu1 (!%p1101_p13), %v1317_v43 }
  0x78   : > { %886 = vmatprep.subr.bf16.mxu1 (!%p1101_p13), %v1318_v44  ;;  %910 = vmatprep.mubr.bf16.mxu1 (!%p1101_p13), %v1457_v8 }
  0x7a   : > { %1177 = vmatpush3.bf16.msra.mxu0 %v1282_v9  ;;  %v1103_v9 = vld [vmem:[%s1692_s4] ss:$0 sm:$0xff] (!%p1101_p13) }
  0x7b   : > { %1178 = vmatprep.subr.bf16.mxu0 %v1453_v4  ;;  %887 = vmatpush1.bf16.msra.mxu1 (!%p1101_p13), %v1323_v47 }
  0x7c   : > { %888 = vmatprep.subr.bf16.mxu1 (!%p1101_p13), %v1324_v50 }
  0x7e   : > { %1179 = vmatpush3.bf16.msra.mxu0 %v1283_v10 }
  0x7f   : > { %1180 = vmatprep.subr.bf16.mxu0 %v1453_v4  ;;  %889 = vmatpush1.bf16.msra.mxu1 (!%p1101_p13), %v1329_v53  ;;  %v1336_v4 = vld [vmem:[#allocation6 + $0xe4] ss:$16 sps:$4 sm:$0xff] (!%p1101_p13)  }
  0x80   : > { %890 = vmatprep.subr.bf16.mxu1 (!%p1101_p13), %v1330_v0 }
  0x82   : > { %1181 = vmatpush3.bf16.msra.mxu0 %v1284_v11 }
  0x83   : > { %1186 = vmatprep.subr.bf16.mxu0 (!%p1101_p13), %v1455_v22  ;;  %891 = vmatpush1.bf16.msra.mxu1 (!%p1101_p13), %v1335_v3 }
  0x84   : > { %892 = vmatprep.subr.bf16.mxu1 (!%p1101_p13), %v1336_v4 }
  0x85   : > { %1183 = vmatmul.mubr.bf16.vlgmr.msra.gmra.mrb[0].mxu0 %v1285_v12 }
  0x86   : > { %1187 = vmatpush3.bf16.msra.mxu0 (!%p1101_p13), %v1286_v21  ;;  %1202 = vmatprep.mubr.msk.bf16.mxu0 (!%p1101_p13), %vm1456_vm1, %v1455_v22  ;;  %v698_v21 = vlaneseq (!%p1101_p13) }
  0x87   : > { %1188 = vmatprep.subr.bf16.mxu0 (!%p1101_p13), %v1455_v22  ;;  %893 = vmatpush1.bf16.msra.mxu1 (!%p1101_p13), %v1341_v7 }
  0x8a   : > { %1189 = vmatpush3.bf16.msra.mxu0 (!%p1101_p13), %v1287_v23 }
  0x8b   : > { %1190 = vmatprep.subr.bf16.mxu0 (!%p1101_p13), %v1455_v22 }
  0x8e   : > { %1191 = vmatpush3.bf16.msra.mxu0 (!%p1101_p13), %v1288_v24 }
  0x8f   : > { %1192 = vmatprep.subr.bf16.mxu0 (!%p1101_p13), %v1455_v22 }
  0x92   : > { %1193 = vmatpush3.bf16.msra.mxu0 (!%p1101_p13), %v1289_v26 }
  0x93   : > { %1194 = vmatprep.subr.bf16.mxu0 (!%p1101_p13), %v1455_v22 }
  0x96   : > { %1195 = vmatpush3.bf16.msra.mxu0 (!%p1101_p13), %v1290_v27 }
  0x97   : > { %1196 = vmatprep.subr.bf16.mxu0 (!%p1101_p13), %v1455_v22 }
  0x9a   : > { %1197 = vmatpush3.bf16.msra.mxu0 (!%p1101_p13), %v1291_v35 }
  0x9b   : > { %1198 = vmatprep.subr.bf16.mxu0 (!%p1101_p13), %v1455_v22 }
  0x9e   : > { %1199 = vmatpush3.bf16.msra.mxu0 (!%p1101_p13), %v1292_v41 }
  0x9f   : > { %1200 = vmatprep.subr.bf16.mxu0 (!%p1101_p13), %v1455_v22  ;;  %v699_v22 = vshrl.u32 (!%p1101_p13), %v698_v21, 7 }
  0xa1   : > { %v700_v23 = vsub.s32 (!%p1101_p13), 0, %v699_v22  ;;  %v708_v24 = vsub.s32 (!%p1101_p13), 2, %v699_v22  ;;  %v704_v26 = vsub.s32 (!%p1101_p13), 1, %v699_v22  ;;  %v712_v27 = vsub.s32 (!%p1101_p13), 3, %v699_v22 }
  0xa2   : > { %1201 = vmatpush3.bf16.msra.mxu0 (!%p1101_p13), %v1293_v45 }
  0xa3   : > { %921 = vmatprep.subr.bf16.mxu0 (!%p1101_p13), %v1298_v46  ;;  %v709_v29 = vrot.slane (!%p1101_p13), %v696_v25, %v708_v24  ;;  %v705_v30 = vrot.slane (!%p1101_p13), %v696_v25, %v704_v26 }
 0x157   : > { %526 = sbr.rel (%p1101_p13) target bundleno = 803 (0x323), region = 105 }
 0x158   : > { %v512_v14 = vpop.f32.mrb[0].mxu0 }
 0x159   : > { %v519_v16 = vadd.f32 %v512_v14, %v404_v13  ;;  %v1184_v17 = vpop.f32.mrb[1].mxu0 }
 0x15a   : > { %v515_v18 = vpop.f32.mrb[2].mxu0 }
 0x15b   : > { %521 = vst [vmem:[#allocation2] sm:$0xff] %v519_v16  ;;  %v520_v19 = vadd.f32 %v515_v18, %v405_v15  ;;  %v1185_v20 = vpop.f32.mrb[3].mxu0 }
 0x15d   : > { %522 = vst [vmem:[#allocation2 + $0x8] sm:$0xff] %v520_v19 }
 0x162   : > { %v527_v28 = vld [vmem:[#allocation2] sm:$0xff] }
 0x163   : > { %v536_v36 = vadd.f32 %v1102_v32, %v527_v28  ;;  %v701_v28 = vrot.slane %v696_v25, %v700_v23 }
 0x164   : > { %v528_v31 = vld [vmem:[#allocation2 + $0x8] sm:$0xff] }
 0x165   : > { %v537_v37 = vadd.f32 %v1102_v32, %v528_v31  ;;  %v540_v40 = vmul.f32 0.01, %v536_v36  ;;  %vm538_vm2 = vcmp.gt.f32.partialorder %v536_v36, 0.0  ;;  %v713_v31 = vrot.slane %v696_v25, %v712_v27 }
 0x167   : > { %v541_v42 = vmul.f32 0.01, %v537_v37  ;;  %vm539_vm3 = vcmp.gt.f32.partialorder %v537_v37, 0.0  ;;  %v542_v48 = vsel %vm538_vm2, %v536_v36, %v540_v40 }
 0x169   : > { %v543_v49 = vsel %vm539_vm3, %v537_v37, %v541_v42 }
 0x16a   : > { %v544_v51 = vpack.c.bf16 %v543_v49, %v542_v48 }
 0x16c   : > { %1203 = vmatmul.mubr.bf16.vlgmr.msra.gmra.mrb[0].mxu0 %v544_v51 }
 0x16d   : > { %922 = vmatpush1.bf16.msra.mxu0 %v1296_v52  ;;  %953 = vmatprep.mubr.bf16.mxu0 %v1457_v8 }
 0x16e   : > { %923 = vmatprep.subr.bf16.mxu0 %v1304_v54 }
 0x171   : > { %924 = vmatpush1.bf16.msra.mxu0 %v1302_v55 }
 0x172   : > { %925 = vmatprep.subr.bf16.mxu0 %v1310_v56 }
 0x175   : > { %926 = vmatpush1.bf16.msra.mxu0 %v1308_v57 }
 0x176   : > { %927 = vmatprep.subr.bf16.mxu0 %v1316_v58 }
 0x179   : > { %928 = vmatpush1.bf16.msra.mxu0 %v1314_v59 }
 0x17a   : > { %929 = vmatprep.subr.bf16.mxu0 %v1322_v60 }
 0x17d   : > { %930 = vmatpush1.bf16.msra.mxu0 %v1320_v61 }
 0x17e   : > { %931 = vmatprep.subr.bf16.mxu0 %v1328_v62 }
 0x181   : > { %932 = vmatpush1.bf16.msra.mxu0 %v1326_v63 }
 0x182   : > { %933 = vmatprep.subr.bf16.mxu0 %v1334_v1 }
 0x185   : > { %934 = vmatpush1.bf16.msra.mxu0 %v1332_v2 }
 0x186   : > { %935 = vmatprep.subr.bf16.mxu0 %v1340_v5 }
 0x189   : > { %936 = vmatpush1.bf16.msra.mxu0 %v1338_v6 }
 0x23f   : > { %v650_v10 = vpop.f32.mrb[0].mxu0 }
 0x240   : > { %v651_v11 = vadd.f32 %v1103_v9, %v650_v10  ;;  %v1204_v12 = vpop.f32.mrb[1].mxu0 }
 0x241   : > { %v653_v13 = vpop.f32.mrb[2].mxu0 }
 0x242   : > { %v659_v14 = vmul.f32 0.01, %v651_v11  ;;  %v654_v15 = vadd.f32 %v1103_v9, %v653_v13  ;;  %v1205_v16 = vpop.f32.mrb[3].mxu0  ;;  %vm657_vm4 = vcmp.gt.f32.partialorder %v651_v11, 0.0 }
 0x244   : > { %vm658_vm5 = vcmp.gt.f32.partialorder %v654_v15, 0.0  ;;  %v660_v17 = vmul.f32 0.01, %v654_v15  ;;  %v661_v18 = vsel %vm657_vm4, %v651_v11, %v659_v14 }
 0x246   : > { %v662_v19 = vsel %vm658_vm5, %v654_v15, %v660_v17 }
 0x247   : > { %v663_v20 = vpack.c.bf16 %v662_v19, %v661_v18 }
 0x249   : > { %911 = vmatmul.mubr.bf16.vlgmr.msra.gmra.mrb[0].mxu1 %v663_v20  ;;  %954 = vmatmul.mubr.bf16.vlgmr.msra.gmra.mrb[4].mxu0 %v663_v20 }
 0x31c   : > { %v912_v32 = vpop.f32.mrb[0].mxu1  ;;  %v955_v33 = vpop.f32.mrb[4].mxu0 }
 0x31d   : > { %v913_v34 = vadd.f32 %v912_v32, %v701_v28  ;;  %v956_v35 = vadd.f32 %v955_v33, %v709_v29  ;;  %v914_v36 = vpop.f32.mrb[1].mxu1  ;;  %v957_v37 = vpop.f32.mrb[5].mxu0 }
 0x31e   : > { %v915_v38 = vadd.f32 %v914_v36, %v705_v30  ;;  %v958_v39 = vadd.f32 %v957_v37, %v713_v31  ;;  %v916_v40 = vpop.f32.mrb[2].mxu1  ;;  %v959_v41 = vpop.f32.mrb[6].mxu0 }
 0x31f   : > { %964 = vst [vmem:[%s1695_s7] sm:$0xff] %v913_v34  ;;  %966 = vst [vmem:[%s1695_s7 + $0x10] sm:$0xff] %v956_v35  ;;  %v917_v42 = vadd.f32 %v916_v40, %v701_v28  ;;  %v960_v43 = vadd.f32 %v959_v41, %v709_v29  ;;  %v918_v44 = vpop.f32.mrb[3].mxu1  ;;  %v961_v45 = vpop.f32.mrb[7].mxu0 }
 0x320   : > { %965 = vst [vmem:[%s1695_s7 + $0x8] sm:$0xff] %v915_v38  ;;  %967 = vst [vmem:[%s1695_s7 + $0x18] sm:$0xff] %v958_v39  ;;  %v919_v46 = vadd.f32 %v918_v44, %v705_v30  ;;  %v962_v47 = vadd.f32 %v961_v45, %v713_v31 }
 0x321   : > { %968 = vst [vmem:[%s1695_s7 + $0x20] sm:$0xff] %v917_v42  ;;  %970 = vst [vmem:[%s1695_s7 + $0x30] sm:$0xff] %v960_v43 }
 0x322   : > { %969 = vst [vmem:[%s1695_s7 + $0x28] sm:$0xff] %v919_v46  ;;  %971 = vst [vmem:[%s1695_s7 + $0x38] sm:$0xff] %v962_v47 }
 0x323 PF: > { %s19_s28 = sadd.s32 1, %s1444_s28   ;;  %s1708_s19 = sld [smem:[#allocation10_spill]] }
 0x324   : > { %p16_p0 = scmp.ge.s32.totalorder %s19_s28, 4   ;;  %s1709_s24 = smov %s1432_s25 }
 0x325   : > { %s1710_s25 = smov %s1548_s13  ;;  %s1711_s26 = smov %s1440_s27 }
 0x326   :  { %18 = sbr.rel (!%p16_p0) target bundleno = 4 (0x4), region = 144 }
 0x329   : > { %s1712_s27 = smov %s1708_s19 }
 0x32d   :  { %996 = vsyncpa [#allocation5], 1 }
 0x32e   :  { %998 = vsyncpa [#allocation5 + $0x1], 1 }
 0x32f   :  { %999 = vsyncpa [#allocation7], 1 }

</bundles_post_ra>
